<compile_context>
chip_gen: v7x
topology: tpu7x:2x2x1
jax: 0.10.0
libtpu: 0.0.40
codegen_flags: <defaults>
</compile_context>

<pallas_src>
import jax
import jax.numpy as jnp
from jax.experimental import pallas as pl
from jax.experimental.pallas import tpu as pltpu


IN_FEATURES = 784          # 28 * 28
IN_PAD = 896               # 784 padded up to a multiple of 128
H1, H2, H3 = 512, 512, 256

TILE_M_MAX = 256           # rows per branch per grid step (fills a 256-wide MXU)
ROW_ALIGN = 16             # bf16 packs 16 rows per sublane tile


def _round_up(x, m):
    return (x + m - 1) // m * m


def siamese_kernel(x_ref,
                   w1_ref, b1_ref,
                   w2_ref, b2_ref,
                   w3_ref, b3_ref,
                   w4_ref, b4_ref,
                   o_ref):
    """One batch tile of the fused siamese forward.

    x_ref: (2, tm, IN_PAD) bf16 -- branch 1 and branch 2 rows for the SAME
    batch indices, so the |h1 - h2| pairs stay inside this grid step.  The two
    branches are merged to (2*tm, IN_PAD) (no-op: tm % 16 == 0) so each Linear
    layer is a single bf16 MXU pass with f32 accumulation.  fc4 (256 -> 1)
    runs as a VPU multiply + XLU lane reduce instead of an N=1 MXU matmul.
    Elementwise math (ReLU / abs / sigmoid) stays in f32 (v5e has no bf16 VPU).
    """
    tm = x_ref.shape[1]
    x = x_ref[...].reshape(2 * tm, x_ref.shape[2])

    def layer(h, w_ref, b_ref):
        z = jnp.dot(h, w_ref[...], preferred_element_type=jnp.float32)
        return jnp.maximum(z + b_ref[...], 0.0)

    h = layer(x, w1_ref, b1_ref).astype(jnp.bfloat16)
    h = layer(h, w2_ref, b2_ref).astype(jnp.bfloat16)
    h = layer(h, w3_ref, b3_ref)                       # keep f32 for |h1 - h2|

    dist = jnp.abs(h[:tm] - h[tm:])                    # tile-aligned split (tm % 8 == 0)

    # fc4 (256 -> 1): VPU elementwise multiply + lane reduction (MXU stays free).
    logit = jnp.sum(dist * w4_ref[...], axis=-1, keepdims=True) + b4_ref[...]
    o_ref[...] = jax.nn.sigmoid(logit)


def prepare_params(params):
    """One-time conversion of PyTorch-convention (out, in) f32 params into the
    kernel layout: weights (in, out) bf16 (fc1 zero-padded 784 -> 896 on the
    contraction dim), biases (1, out) f32, fc4 as a (1, 256) f32 row + scalar.
    Do this once; the per-call path then has zero transpose/cast traffic."""
    (w1, b1), (w2, b2), (w3, b3), (w4, b4) = params

    w1t = jnp.zeros((IN_PAD, H1), jnp.float32).at[:IN_FEATURES].set(w1.T)
    # TODO(synk): generation-specific weight quantization (int8 on v5e/v6e,
    # fp8 e4m3 on v7x) would halve the dominant weight DMA for tiny batches;
    # kept bf16 here for a single portable code path.
    return (
        w1t.astype(jnp.bfloat16),       b1.reshape(1, -1).astype(jnp.float32),
        w2.T.astype(jnp.bfloat16),      b2.reshape(1, -1).astype(jnp.float32),
        w3.T.astype(jnp.bfloat16),      b3.reshape(1, -1).astype(jnp.float32),
        w4.reshape(1, -1).astype(jnp.float32),      # (1, 256) row for the reduce
        b4.reshape(1, 1).astype(jnp.float32),
    )


def siamese_forward(x1, x2, prepared):
    """x1, x2: (B, 1, 28, 28) float32 NCHW.  Returns (B, 1) float32."""
    B = x1.shape[0]
    tm = min(TILE_M_MAX, _round_up(max(B, 1), ROW_ALIGN))   # rows / branch / step
    r = _round_up(max(B, 1), tm)                             # padded per-branch rows
    num_tiles = r // tm

    # Single input slab, both branches written in place (no concat copy).
    xf1 = x1.reshape(B, -1).astype(jnp.bfloat16)
    xf2 = x2.reshape(B, -1).astype(jnp.bfloat16)
    x_cat = jnp.zeros((2, r, IN_PAD), jnp.bfloat16)
    x_cat = x_cat.at[0, :B, :IN_FEATURES].set(xf1)
    x_cat = x_cat.at[1, :B, :IN_FEATURES].set(xf2)

    args = (x_cat,) + tuple(prepared)

    def pinned_spec(shape):
        # Constant block index -> fetched once, VMEM-resident across all tiles.
        nd = len(shape)
        return pl.BlockSpec(shape, lambda i, _nd=nd: (0,) * _nd)

    in_specs = [pl.BlockSpec((2, tm, IN_PAD), lambda i: (0, i, 0))]
    in_specs += [pinned_spec(p.shape) for p in prepared]

    out = pl.pallas_call(
        siamese_kernel,
        out_shape=jax.ShapeDtypeStruct((r, 1), jnp.float32),
        grid=(num_tiles,),
        in_specs=in_specs,
        out_specs=pl.BlockSpec((tm, 1), lambda i: (i, 0)),
        compiler_params=pltpu.CompilerParams(
            dimension_semantics=("parallel",),   # megacore shard on v7x
            vmem_limit_bytes=32 << 20,
        ),
    )(*args)
    return out[:B]


def init_params(key):
    """Deterministic parameter init matching the nn.Linear shapes (f32)."""
    dims = [(H1, IN_FEATURES), (H2, H1), (H3, H2), (1, H3)]
    params = []
    for out_d, in_d in dims:
        key, kw, kb = jax.random.split(key, 3)
        bound = 1.0 / jnp.sqrt(in_d)
        w = jax.random.uniform(kw, (out_d, in_d), jnp.float32, -bound, bound)
        b = jax.random.uniform(kb, (out_d,), jnp.float32, -bound, bound)
        params.append((w, b))
    return params


def reference_forward(x1, x2, params):
    """Pure-JAX f32 reference with the original PyTorch semantics."""
    (w1, b1), (w2, b2), (w3, b3), (w4, b4) = params
    B = x1.shape[0]

    def branch(x):
        h = jax.nn.relu(x.reshape(B, -1) @ w1.T + b1)
        h = jax.nn.relu(h @ w2.T + b2)
        h = jax.nn.relu(h @ w3.T + b3)
        return h

    d = jnp.abs(branch(x1) - branch(x2))
    return jax.nn.sigmoid(d @ w4.T + b4).reshape(B, 1)


if __name__ == "__main__":
    key = jax.random.PRNGKey(0)
    k_params, k_x1, k_x2, k_y1, k_y2 = jax.random.split(key, 5)

    params = init_params(k_params)
    prepared = prepare_params(params)    # one-time layout/cast, off the hot path

    # Small-batch case (single grid step).
    B = 2
    x1 = jax.random.normal(k_x1, (B, 1, 28, 28), jnp.float32)
    x2 = jax.random.normal(k_x2, (B, 1, 28, 28), jnp.float32)

    out = jax.block_until_ready(siamese_forward(x1, x2, prepared))
    ref = reference_forward(x1, x2, params)
    assert out.shape == (B, 1), out.shape
    # bf16 weights/activations vs f32 reference -> loose tolerance.
    assert jnp.allclose(out, ref, atol=5e-2, rtol=5e-2), (out, ref)

    # Larger batch exercising the multi-tile (batch-tiled) grid path.
    B2 = 300
    y1 = jax.random.normal(k_y1, (B2, 1, 28, 28), jnp.float32)
    y2 = jax.random.normal(k_y2, (B2, 1, 28, 28), jnp.float32)

    out2 = jax.block_until_ready(siamese_forward(y1, y2, prepared))
    ref2 = reference_forward(y1, y2, params)
    assert out2.shape == (B2, 1), out2.shape
    assert jnp.allclose(out2, ref2, atol=5e-2, rtol=5e-2)

    print("KERNEL_OK")
</pallas_src>

<mosaic_0001>
module attributes {stable_mosaic.version = 11 : i64} {
  func.func @siamese_kernel(%arg0: i32, %arg1: memref<2x16x896xbf16, #tpu.memory_space<vmem>>, %arg2: memref<896x512xbf16, #tpu.memory_space<vmem>>, %arg3: memref<1x512xf32, #tpu.memory_space<vmem>>, %arg4: memref<512x512xbf16, #tpu.memory_space<vmem>>, %arg5: memref<1x512xf32, #tpu.memory_space<vmem>>, %arg6: memref<512x256xbf16, #tpu.memory_space<vmem>>, %arg7: memref<1x256xf32, #tpu.memory_space<vmem>>, %arg8: memref<1x256xf32, #tpu.memory_space<vmem>>, %arg9: memref<1x1xf32, #tpu.memory_space<vmem>>, %arg10: memref<16x1xf32, #tpu.memory_space<vmem>>) attributes {dimension_semantics = [#tpu.dimension_semantics<parallel>], iteration_bounds = array<i64: 1>, scalar_prefetch = 0 : i64, scratch_operands = 0 : i64, tpu.core_type = #tpu.core_type<tc>, window_params = [{transform_indices = @transform_0, window_bounds = array<i64: 2, 16, 896>}, {pipeline_mode = #tpu.pipeline_mode<synchronous>, transform_indices = @transform_1, window_bounds = array<i64: 896, 512>}, {pipeline_mode = #tpu.pipeline_mode<synchronous>, transform_indices = @transform_2, window_bounds = array<i64: 1, 512>}, {pipeline_mode = #tpu.pipeline_mode<synchronous>, transform_indices = @transform_3, window_bounds = array<i64: 512, 512>}, {pipeline_mode = #tpu.pipeline_mode<synchronous>, transform_indices = @transform_4, window_bounds = array<i64: 1, 512>}, {pipeline_mode = #tpu.pipeline_mode<synchronous>, transform_indices = @transform_5, window_bounds = array<i64: 512, 256>}, {pipeline_mode = #tpu.pipeline_mode<synchronous>, transform_indices = @transform_6, window_bounds = array<i64: 1, 256>}, {pipeline_mode = #tpu.pipeline_mode<synchronous>, transform_indices = @transform_7, window_bounds = array<i64: 1, 256>}, {pipeline_mode = #tpu.pipeline_mode<synchronous>, transform_indices = @transform_8, window_bounds = array<i64: 1, 1>}, {transform_indices = @transform_9, window_bounds = array<i64: 16, 1>}]} {
    %c0 = arith.constant 0 : index
    %c0_0 = arith.constant 0 : index
    %c0_1 = arith.constant 0 : index
    %0 = vector.load %arg1[%c0, %c0_0, %c0_1] : memref<2x16x896xbf16, #tpu.memory_space<vmem>>, vector<2x16x896xbf16>
    %1 = vector.shape_cast %0 : vector<2x16x896xbf16> to vector<32x896xbf16>
    %c0_2 = arith.constant 0 : index
    %c0_3 = arith.constant 0 : index
    %2 = vector.load %arg2[%c0_2, %c0_3] : memref<896x512xbf16, #tpu.memory_space<vmem>>, vector<896x512xbf16>
    %cst = arith.constant dense<0.000000e+00> : vector<32x512xf32>
    %3 = tpu.matmul %1, %2, %cst {dimension_numbers = #tpu.dot_dimension_numbers<[1], [0], [0], [1], [0, 0, 1, 1], [], []>} : vector<32x896xbf16>, vector<896x512xbf16>, vector<32x512xf32> -> vector<32x512xf32>
    %c0_4 = arith.constant 0 : index
    %c0_5 = arith.constant 0 : index
    %4 = vector.load %arg3[%c0_4, %c0_5] : memref<1x512xf32, #tpu.memory_space<vmem>>, vector<1x512xf32>
    %5 = vector.broadcast %4 : vector<1x512xf32> to vector<32x512xf32>
    %6 = arith.addf %3, %5 : vector<32x512xf32>
    %cst_6 = arith.constant 0.000000e+00 : f32
    %7 = vector.broadcast %cst_6 : f32 to vector<32x512xf32>
    %8 = arith.maximumf %6, %7 : vector<32x512xf32>
    %9 = arith.truncf %8 : vector<32x512xf32> to vector<32x512xbf16>
    %c0_7 = arith.constant 0 : index
    %c0_8 = arith.constant 0 : index
    %10 = vector.load %arg4[%c0_7, %c0_8] : memref<512x512xbf16, #tpu.memory_space<vmem>>, vector<512x512xbf16>
    %cst_9 = arith.constant dense<0.000000e+00> : vector<32x512xf32>
    %11 = tpu.matmul %9, %10, %cst_9 {dimension_numbers = #tpu.dot_dimension_numbers<[1], [0], [0], [1], [0, 0, 1, 1], [], []>} : vector<32x512xbf16>, vector<512x512xbf16>, vector<32x512xf32> -> vector<32x512xf32>
    %c0_10 = arith.constant 0 : index
    %c0_11 = arith.constant 0 : index
    %12 = vector.load %arg5[%c0_10, %c0_11] : memref<1x512xf32, #tpu.memory_space<vmem>>, vector<1x512xf32>
    %13 = vector.broadcast %12 : vector<1x512xf32> to vector<32x512xf32>
    %14 = arith.addf %11, %13 : vector<32x512xf32>
    %cst_12 = arith.constant 0.000000e+00 : f32
    %15 = vector.broadcast %cst_12 : f32 to vector<32x512xf32>
    %16 = arith.maximumf %14, %15 : vector<32x512xf32>
    %17 = arith.truncf %16 : vector<32x512xf32> to vector<32x512xbf16>
    %c0_13 = arith.constant 0 : index
    %c0_14 = arith.constant 0 : index
    %18 = vector.load %arg6[%c0_13, %c0_14] : memref<512x256xbf16, #tpu.memory_space<vmem>>, vector<512x256xbf16>
    %cst_15 = arith.constant dense<0.000000e+00> : vector<32x256xf32>
    %19 = tpu.matmul %17, %18, %cst_15 {dimension_numbers = #tpu.dot_dimension_numbers<[1], [0], [0], [1], [0, 0, 1, 1], [], []>} : vector<32x512xbf16>, vector<512x256xbf16>, vector<32x256xf32> -> vector<32x256xf32>
    %c0_16 = arith.constant 0 : index
    %c0_17 = arith.constant 0 : index
    %20 = vector.load %arg7[%c0_16, %c0_17] : memref<1x256xf32, #tpu.memory_space<vmem>>, vector<1x256xf32>
    %21 = vector.broadcast %20 : vector<1x256xf32> to vector<32x256xf32>
    %22 = arith.addf %19, %21 : vector<32x256xf32>
    %cst_18 = arith.constant 0.000000e+00 : f32
    %23 = vector.broadcast %cst_18 : f32 to vector<32x256xf32>
    %24 = arith.maximumf %22, %23 : vector<32x256xf32>
    %25 = vector.extract_strided_slice %24 {offsets = [0, 0], sizes = [16, 256], strides = [1, 1]} : vector<32x256xf32> to vector<16x256xf32>
    %26 = vector.extract_strided_slice %24 {offsets = [16, 0], sizes = [16, 256], strides = [1, 1]} : vector<32x256xf32> to vector<16x256xf32>
    %27 = arith.subf %25, %26 : vector<16x256xf32>
    %28 = math.absf %27 : vector<16x256xf32>
    %c0_19 = arith.constant 0 : index
    %c0_20 = arith.constant 0 : index
    %29 = vector.load %arg8[%c0_19, %c0_20] : memref<1x256xf32, #tpu.memory_space<vmem>>, vector<1x256xf32>
    %30 = vector.broadcast %29 : vector<1x256xf32> to vector<16x256xf32>
    %31 = arith.mulf %28, %30 : vector<16x256xf32>
    %cst_21 = arith.constant dense<0.000000e+00> : vector<16xf32>
    %32 = vector.multi_reduction <add>, %31, %cst_21 [1] : vector<16x256xf32> to vector<16xf32>
    %33 = vector.shape_cast %32 : vector<16xf32> to vector<16x1xf32>
    %c0_22 = arith.constant 0 : index
    %c0_23 = arith.constant 0 : index
    %34 = vector.load %arg9[%c0_22, %c0_23] : memref<1x1xf32, #tpu.memory_space<vmem>>, vector<1x1xf32>
    %35 = vector.broadcast %34 : vector<1x1xf32> to vector<16x1xf32>
    %36 = arith.addf %33, %35 : vector<16x1xf32>
    %37 = arith.negf %36 : vector<16x1xf32>
    %38 = math.exp %37 : vector<16x1xf32>
    %cst_24 = arith.constant 1.000000e+00 : f32
    %39 = vector.broadcast %cst_24 : f32 to vector<16x1xf32>
    %40 = arith.addf %39, %38 : vector<16x1xf32>
    %41 = arith.divf %39, %40 : vector<16x1xf32>
    %c0_25 = arith.constant 0 : index
    %c0_26 = arith.constant 0 : index
    %42 = vector.load %arg10[%c0_25, %c0_26] : memref<16x1xf32, #tpu.memory_space<vmem>>, vector<16x1xf32>
    tpu.vector_store %arg10[%c0_25, %c0_26], %41 {strides = array<i32>} : memref<16x1xf32, #tpu.memory_space<vmem>>, vector<16x1xf32>,
    return
  }
  func.func @transform_0(%arg0: i32) -> (i32, i32, i32) {
    %c0_i32 = arith.constant 0 : i32
    %c0_i32_0 = arith.constant 0 : i32
    %c0_i32_1 = arith.constant 0 : i32
    return %c0_i32, %arg0, %c0_i32_0 : i32, i32, i32
  }
  func.func @transform_1(%arg0: i32) -> (i32, i32) {
    %c0_i32 = arith.constant 0 : i32
    %c0_i32_0 = arith.constant 0 : i32
    %c0_i32_1 = arith.constant 0 : i32
    return %c0_i32, %c0_i32_0 : i32, i32
  }
  func.func @transform_2(%arg0: i32) -> (i32, i32) {
    %c0_i32 = arith.constant 0 : i32
    %c0_i32_0 = arith.constant 0 : i32
    %c0_i32_1 = arith.constant 0 : i32
    return %c0_i32, %c0_i32_0 : i32, i32
  }
  func.func @transform_3(%arg0: i32) -> (i32, i32) {
    %c0_i32 = arith.constant 0 : i32
    %c0_i32_0 = arith.constant 0 : i32
    %c0_i32_1 = arith.constant 0 : i32
    return %c0_i32, %c0_i32_0 : i32, i32
  }
  func.func @transform_4(%arg0: i32) -> (i32, i32) {
    %c0_i32 = arith.constant 0 : i32
    %c0_i32_0 = arith.constant 0 : i32
    %c0_i32_1 = arith.constant 0 : i32
    return %c0_i32, %c0_i32_0 : i32, i32
  }
  func.func @transform_5(%arg0: i32) -> (i32, i32) {
    %c0_i32 = arith.constant 0 : i32
    %c0_i32_0 = arith.constant 0 : i32
    %c0_i32_1 = arith.constant 0 : i32
    return %c0_i32, %c0_i32_0 : i32, i32
  }
  func.func @transform_6(%arg0: i32) -> (i32, i32) {
    %c0_i32 = arith.constant 0 : i32
    %c0_i32_0 = arith.constant 0 : i32
    %c0_i32_1 = arith.constant 0 : i32
    return %c0_i32, %c0_i32_0 : i32, i32
  }
  func.func @transform_7(%arg0: i32) -> (i32, i32) {
    %c0_i32 = arith.constant 0 : i32
    %c0_i32_0 = arith.constant 0 : i32
    %c0_i32_1 = arith.constant 0 : i32
    return %c0_i32, %c0_i32_0 : i32, i32
  }
  func.func @transform_8(%arg0: i32) -> (i32, i32) {
    %c0_i32 = arith.constant 0 : i32
    %c0_i32_0 = arith.constant 0 : i32
    %c0_i32_1 = arith.constant 0 : i32
    return %c0_i32, %c0_i32_0 : i32, i32
  }
  func.func @transform_9(%arg0: i32) -> (i32, i32) {
    %c0_i32 = arith.constant 0 : i32
    %c0_i32_0 = arith.constant 0 : i32
    return %arg0, %c0_i32 : i32, i32
  }
}

</mosaic_0001>

<bundles_post_ra>
// kernel: tpu_custom_call.1
= control target key start
LH: loop header
LB: loop body
LE: loop exit
PB: predicated region body
PF: predicated region fallthrough
CT: control target
= control target key end

     0   :  { %s5156_s0 = inlined_call_operand.hbm [shape: bf16[2,16,896], index: 0, kind: input, shape index: {}]   ;;  %s5157_s1 = inlined_call_operand.hbm [shape: bf16[896,512], index: 1, kind: input, shape index: {}]   ;;  %s5158_s2 = inlined_call_operand.vmem [shape: f32[1,512], index: 2, kind: input, shape index: {}]   ;;  %s5159_s3 = inlined_call_operand.hbm [shape: bf16[512,512], index: 3, kind: input, shape index: {}]   ;;  %s5160_s4 = inlined_call_operand.vmem [shape: f32[1,512], index: 4, kind: input, shape index: {}]   ;;  %s5161_s5 = inlined_call_operand.hbm [shape: bf16[512,256], index: 5, kind: input, shape index: {}]   ;;  %s5162_s6 = inlined_call_operand.vmem [shape: f32[1,256], index: 6, kind: input, shape index: {}]   ;;  %s5163_s7 = inlined_call_operand.vmem [shape: f32[1,256], index: 7, kind: input, shape index: {}]   ;;  %s5164_s8 = inlined_call_operand.<no memory space> [shape: f32[1,1], index: 8, kind: input, shape index: {}]   ;;  %s5165_s9 = inlined_call_operand.vmem [shape: f32[16,1], index: 9, kind: output, shape index: {}]  }
   0x1   :  { %v14_v0 = vstv %s5164_s8 }
   0x2   :  { %15 = vst [vmem:[#allocation2] sm:$0x1] %v14_v0 }
   0x3   :  { %16 = vsyncpa [#allocation4], 0 }
   0x4   :  { %17 = vsyncpa [#allocation6], 0 }
   0x5   :  { %18 = vsyncpa [#allocation9], 0  ;;  %s4891_s11 = smov [#allocation5]   ;;  %s4797_s15 = scalar_lea.hbm %s5157_s1, 28672 }
   0x6   :  { %s36_s12 = sshll.u32 %s4891_s11, 4  ;;  %p4798_p0 = scmp.ne.s32.totalorder %s5157_s1, %s4797_s15  ;;  %s37_s12 = int_to_ptr.vmem [resolvable:$true] %s36_s12 }
   0x7   :  { %p4801_p1 = scmp.lt.u32.totalorder %s4797_s15, %s5157_s1 }
   0x9   :  { %p4803_p2 = pnand %p4801_p1, %p4798_p0 }
   0xb   :  { %4806 = shalt.err (!%p4803_p2)
}
   0xc   :  { %s4807_s8 = scalar_lea.vmem %s37_s12, 28672  ;;  %p4812_p4 = scmp.lt.s32.totalorder %s37_s12, %s37_s12 }
   0xd   :  { %p4808_p3 = scmp.ne.s32.totalorder %s37_s12, %s4807_s8  ;;  %p4813_p5 = scmp.lt.s32.totalorder %s4807_s8, %s4807_s8 }
   0xf   :  { %p4814_p6 = por %p4813_p5, %p4812_p4 }
  0x11   :  { %p4815_p7 = pnand %p4814_p6, %p4808_p3 }
  0x13   :  { %4818 = shalt.err (!%p4815_p7)
}
  0x14   :  { %s4892_s20 = smov 256   ;;  %s4893_s21 = smov 16  }
  0x15   :  { %42 = dma.hbm_to_vmem [thread:$0]  %s5157_s1, 28672, %s37_s12, [#allocation6], %s4892_s20, %s4892_s20, %s4893_s21  }
  0x16   :  { %s4894_s24 = smov [#allocation3]   ;;  %s4819_s28 = scalar_lea.hbm %s5156_s0, 1792 }
  0x17   :  { %s24_s25 = sshll.u32 %s4894_s24, 4  ;;  %p4820_p8 = scmp.ne.s32.totalorder %s5156_s0, %s4819_s28  ;;  %s25_s25 = int_to_ptr.vmem [resolvable:$true] %s24_s25 }
  0x18   :  { %p4823_p9 = scmp.lt.u32.totalorder %s4819_s28, %s5156_s0 }
  0x1a   :  { %p4825_p10 = pnand %p4823_p9, %p4820_p8 }
  0x1c   :  { %4828 = shalt.err (!%p4825_p10)
}
  0x1d   :  { %s4829_s13 = scalar_lea.vmem %s25_s25, 1792  ;;  %p4834_p12 = scmp.lt.s32.totalorder %s25_s25, %s25_s25 }
  0x1e   :  { %p4830_p11 = scmp.ne.s32.totalorder %s25_s25, %s4829_s13  ;;  %p4835_p13 = scmp.lt.s32.totalorder %s4829_s13, %s4829_s13 }
  0x20   :  { %p4836_p0 = por %p4835_p13, %p4834_p12 }
  0x22   :  { %p4837_p1 = pnand %p4836_p0, %p4830_p11 }
  0x24   :  { %4840 = shalt.err (!%p4837_p1)
}
  0x25   :  { %s4895_s1 = smov 448   ;;  %s4896_s12 = smov 28  }
  0x26   :  { %30 = dma.hbm_to_vmem [thread:$0]  %s5156_s0, 1792, %s25_s25, [#allocation4], %s4895_s1, %s4895_s1, %s4896_s12  }
  0x27   :  { %s4897_s16 = smov [#allocation7]   ;;  %s4898_s18 = smov [#allocation8]  }
  0x28   :  { %s50_s17 = sshll.u32 %s4897_s16, 4  ;;  %s64_s19 = sshll.u32 %s4898_s18, 4  ;;  %s51_s17 = int_to_ptr.vmem [resolvable:$true] %s50_s17  ;;  %s4982_s19 = int_to_ptr.vmem [resolvable:$true] %s64_s19 }
  0x29   :  { %s4841_s23 = scalar_lea.hbm %s5159_s3, 16384 }
  0x2a   :  { %p4842_p2 = scmp.ne.s32.totalorder %s5159_s3, %s4841_s23  ;;  %p4845_p3 = scmp.lt.u32.totalorder %s4841_s23, %s5159_s3 }
  0x2c   :  { %p4847_p4 = pnand %p4845_p3, %p4842_p2 }
  0x2e   :  { %4850 = shalt.err (!%p4847_p4)
}
  0x2f   :  { %s4851_s0 = scalar_lea.vmem %s51_s17, 16384  ;;  %p4856_p6 = scmp.lt.s32.totalorder %s51_s17, %s51_s17 }
  0x30   :  { %p4852_p5 = scmp.ne.s32.totalorder %s51_s17, %s4851_s0  ;;  %p4857_p7 = scmp.lt.s32.totalorder %s4851_s0, %s4851_s0 }
  0x32   :  { %p4858_p8 = por %p4857_p7, %p4856_p6 }
  0x34   :  { %p4859_p9 = pnand %p4858_p8, %p4852_p5 }
  0x36   :  { %4862 = shalt.err (!%p4859_p9)
}
  0x37   :  { %56 = dma.hbm_to_vmem [thread:$0]  %s5159_s3, 16384, %s51_s17, [#allocation6], %s4892_s20, %s4892_s20, %s4893_s21  }
  0x38   :  { %s4863_s11 = scalar_lea.hbm %s5161_s5, 8192 }
  0x39   :  { %p4864_p10 = scmp.ne.s32.totalorder %s5161_s5, %s4863_s11  ;;  %p4867_p11 = scmp.lt.u32.totalorder %s4863_s11, %s5161_s5 }
  0x3b   :  { %p4869_p12 = pnand %p4867_p11, %p4864_p10 }
  0x3d   :  { %4872 = shalt.err (!%p4869_p12)
}
  0x3e   :  { %s4873_s15 = scalar_lea.vmem %s4982_s19, 8192  ;;  %p4878_p0 = scmp.lt.s32.totalorder %s4982_s19, %s4982_s19 }
  0x3f   :  { %p4874_p13 = scmp.ne.s32.totalorder %s4982_s19, %s4873_s15  ;;  %p4879_p1 = scmp.lt.s32.totalorder %s4873_s15, %s4873_s15 }
  0x41   :  { %p4880_p2 = por %p4879_p1, %p4878_p0 }
  0x43   :  { %p4881_p3 = pnand %p4880_p2, %p4874_p13 }
  0x45   :  { %4884 = shalt.err (!%p4881_p3)
}
  0x46   :  { %s4899_s3 = smov 128   ;;  %s4900_s20 = smov 8  }
  0x47   :  { %70 = dma.hbm_to_vmem [thread:$0]  %s5161_s5, 8192, %s4982_s19, [#allocation9], %s4899_s3, %s4899_s3, %s4900_s20  }
  0x48   :  { %4885 = dma.done.wait [#allocation4], 1792  }
  0x49   :  { %4886 = vsyncadd [#allocation4], 4294965504 }
  0x4a   :  { %4887 = dma.done.wait [#allocation6], 45056  }
  0x4b   :  { %4888 = vsyncadd [#allocation6], 4294922240 }
  0x4c   :  { %4889 = dma.done.wait [#allocation9], 8192  }
  0x4d   :  { %4890 = vsyncadd [#allocation9], 4294959104  ;;  %v4145_v1 = vld [vmem:[#allocation5 + $0x4] ss:$16 sps:$4 sm:$0xff]   ;;  %v4149_v3 = vld [vmem:[#allocation5] ss:$16 sps:$4 sm:$0xff]  }
  0x4e   :  { %v4147_v2 = vld [vmem:[#allocation5 + $0x204] ss:$16 sps:$4 sm:$0xff]   ;;  %1544 = vmatprep.subr.bf16.mxu1 %v4145_v1  ;;  %v4150_v4 = vld [vmem:[#allocation5 + $0x200] ss:$16 sps:$4 sm:$0xff]   ;;  %v5018_v52 = vld [vmem:[#allocation3 + $0xc] ss:$28 sps:$4 sm:$0xff]  }
  0x4f   :  { %1597 = vmatprep.subr.bf16.mxu0 %v4147_v2  ;;  %v4151_v5 = vld [vmem:[#allocation5 + $0x24] ss:$16 sps:$4 sm:$0xff]   ;;  %1545 = vmatpush1.bf16.msra.mxu1 %v4149_v3  ;;  %v4155_v7 = vld [vmem:[#allocation5 + $0x20] ss:$16 sps:$4 sm:$0xff]   ;;  %vm3579_vm0 = vcmask 7168  }
  0x50   :  { %1598 = vmatpush1.bf16.msra.mxu0 %v4150_v4  ;;  %v4153_v6 = vld [vmem:[#allocation5 + $0x224] ss:$16 sps:$4 sm:$0xff]   ;;  %1546 = vmatprep.subr.bf16.mxu1 %v4151_v5  ;;  %v4156_v8 = vld [vmem:[#allocation5 + $0x220] ss:$16 sps:$4 sm:$0xff]   ;;  %v4252_v4 = vld [vmem:[#allocation5 + $0xc] ss:$16 sps:$4 sm:$0xff]  }
  0x51   :  { %1599 = vmatprep.subr.bf16.mxu0 %v4153_v6  ;;  %v4157_v9 = vld [vmem:[#allocation5 + $0x44] ss:$16 sps:$4 sm:$0xff]   ;;  %v4161_v11 = vld [vmem:[#allocation5 + $0x40] ss:$16 sps:$4 sm:$0xff]   ;;  %1629 = vmatprep.mubr.bf16.mxu0 %v5018_v52 }
  0x52   :  { %v4159_v10 = vld [vmem:[#allocation5 + $0x244] ss:$16 sps:$4 sm:$0xff]   ;;  %v4162_v12 = vld [vmem:[#allocation5 + $0x240] ss:$16 sps:$4 sm:$0xff]  }
  0x53   :  { %1547 = vmatpush1.bf16.msra.mxu1 %v4155_v7  ;;  %v4163_v13 = vld [vmem:[#allocation5 + $0x64] ss:$16 sps:$4 sm:$0xff]   ;;  %v4167_v15 = vld [vmem:[#allocation5 + $0x60] ss:$16 sps:$4 sm:$0xff]  }
  0x54   :  { %1600 = vmatpush1.bf16.msra.mxu0 %v4156_v8  ;;  %1548 = vmatprep.subr.bf16.mxu1 %v4157_v9  ;;  %v4165_v14 = vld [vmem:[#allocation5 + $0x264] ss:$16 sps:$4 sm:$0xff]   ;;  %v4168_v16 = vld [vmem:[#allocation5 + $0x260] ss:$16 sps:$4 sm:$0xff]   ;;  %v4250_v8 = vld [vmem:[#allocation5 + $0x8] ss:$16 sps:$4 sm:$0xff]  }
  0x55   :  { %1601 = vmatprep.subr.bf16.mxu0 %v4159_v10  ;;  %v4169_v17 = vld [vmem:[#allocation5 + $0x84] ss:$16 sps:$4 sm:$0xff]   ;;  %v4173_v19 = vld [vmem:[#allocation5 + $0x80] ss:$16 sps:$4 sm:$0xff]   ;;  %v4258_v10 = vld [vmem:[#allocation5 + $0x2c] ss:$16 sps:$4 sm:$0xff]  }
  0x56   :  { %v4171_v18 = vld [vmem:[#allocation5 + $0x284] ss:$16 sps:$4 sm:$0xff]   ;;  %v4174_v20 = vld [vmem:[#allocation5 + $0x280] ss:$16 sps:$4 sm:$0xff]  }
  0x57   :  { %1549 = vmatpush1.bf16.msra.mxu1 %v4161_v11  ;;  %v4175_v21 = vld [vmem:[#allocation5 + $0xa4] ss:$16 sps:$4 sm:$0xff]   ;;  %v4179_v23 = vld [vmem:[#allocation5 + $0xa0] ss:$16 sps:$4 sm:$0xff]  }
  0x58   :  { %1602 = vmatpush1.bf16.msra.mxu0 %v4162_v12  ;;  %1550 = vmatprep.subr.bf16.mxu1 %v4163_v13  ;;  %v4177_v22 = vld [vmem:[#allocation5 + $0x2a4] ss:$16 sps:$4 sm:$0xff]   ;;  %v4180_v24 = vld [vmem:[#allocation5 + $0x2a0] ss:$16 sps:$4 sm:$0xff]   ;;  %v4256_v12 = vld [vmem:[#allocation5 + $0x28] ss:$16 sps:$4 sm:$0xff]  }
  0x59   :  { %1603 = vmatprep.subr.bf16.mxu0 %v4165_v14  ;;  %v4181_v25 = vld [vmem:[#allocation5 + $0xc4] ss:$16 sps:$4 sm:$0xff]   ;;  %v4185_v27 = vld [vmem:[#allocation5 + $0xc0] ss:$16 sps:$4 sm:$0xff]   ;;  %v4264_v14 = vld [vmem:[#allocation5 + $0x4c] ss:$16 sps:$4 sm:$0xff]  }
  0x5a   :  { %v4183_v26 = vld [vmem:[#allocation5 + $0x2c4] ss:$16 sps:$4 sm:$0xff]   ;;  %v4186_v28 = vld [vmem:[#allocation5 + $0x2c0] ss:$16 sps:$4 sm:$0xff]  }
  0x5b   :  { %1551 = vmatpush1.bf16.msra.mxu1 %v4167_v15  ;;  %v4187_v29 = vld [vmem:[#allocation5 + $0xe4] ss:$16 sps:$4 sm:$0xff]   ;;  %v4191_v31 = vld [vmem:[#allocation5 + $0xe0] ss:$16 sps:$4 sm:$0xff]  }
  0x5c   :  { %1604 = vmatpush1.bf16.msra.mxu0 %v4168_v16  ;;  %1552 = vmatprep.subr.bf16.mxu1 %v4169_v17  ;;  %v4189_v30 = vld [vmem:[#allocation5 + $0x2e4] ss:$16 sps:$4 sm:$0xff]   ;;  %v4192_v32 = vld [vmem:[#allocation5 + $0x2e0] ss:$16 sps:$4 sm:$0xff]   ;;  %v4262_v16 = vld [vmem:[#allocation5 + $0x48] ss:$16 sps:$4 sm:$0xff]  }
  0x5d   :  { %1605 = vmatprep.subr.bf16.mxu0 %v4171_v18  ;;  %v4193_v33 = vld [vmem:[#allocation5 + $0x104] ss:$16 sps:$4 sm:$0xff]   ;;  %v4197_v35 = vld [vmem:[#allocation5 + $0x100] ss:$16 sps:$4 sm:$0xff]   ;;  %v4270_v18 = vld [vmem:[#allocation5 + $0x6c] ss:$16 sps:$4 sm:$0xff]  }
  0x5e   :  { %v4195_v34 = vld [vmem:[#allocation5 + $0x304] ss:$16 sps:$4 sm:$0xff]   ;;  %v4198_v36 = vld [vmem:[#allocation5 + $0x300] ss:$16 sps:$4 sm:$0xff]  }
  0x5f   :  { %1553 = vmatpush1.bf16.msra.mxu1 %v4173_v19  ;;  %v4199_v37 = vld [vmem:[#allocation5 + $0x124] ss:$16 sps:$4 sm:$0xff]   ;;  %v4203_v39 = vld [vmem:[#allocation5 + $0x120] ss:$16 sps:$4 sm:$0xff]  }
  0x60   :  { %1606 = vmatpush1.bf16.msra.mxu0 %v4174_v20  ;;  %1554 = vmatprep.subr.bf16.mxu1 %v4175_v21  ;;  %v4201_v38 = vld [vmem:[#allocation5 + $0x324] ss:$16 sps:$4 sm:$0xff]   ;;  %v4204_v40 = vld [vmem:[#allocation5 + $0x320] ss:$16 sps:$4 sm:$0xff]   ;;  %v4268_v20 = vld [vmem:[#allocation5 + $0x68] ss:$16 sps:$4 sm:$0xff]  }
  0x61   :  { %1607 = vmatprep.subr.bf16.mxu0 %v4177_v22  ;;  %v4205_v41 = vld [vmem:[#allocation5 + $0x144] ss:$16 sps:$4 sm:$0xff]   ;;  %v4209_v43 = vld [vmem:[#allocation5 + $0x140] ss:$16 sps:$4 sm:$0xff]   ;;  %v4276_v22 = vld [vmem:[#allocation5 + $0x8c] ss:$16 sps:$4 sm:$0xff]  }
  0x62   :  { %v4207_v42 = vld [vmem:[#allocation5 + $0x344] ss:$16 sps:$4 sm:$0xff]   ;;  %v4210_v44 = vld [vmem:[#allocation5 + $0x340] ss:$16 sps:$4 sm:$0xff]  }
  0x63   :  { %1555 = vmatpush1.bf16.msra.mxu1 %v4179_v23  ;;  %v4211_v45 = vld [vmem:[#allocation5 + $0x164] ss:$16 sps:$4 sm:$0xff]   ;;  %v4215_v47 = vld [vmem:[#allocation5 + $0x160] ss:$16 sps:$4 sm:$0xff]  }
  0x64   :  { %1608 = vmatpush1.bf16.msra.mxu0 %v4180_v24  ;;  %1556 = vmatprep.subr.bf16.mxu1 %v4181_v25  ;;  %v4213_v46 = vld [vmem:[#allocation5 + $0x364] ss:$16 sps:$4 sm:$0xff]   ;;  %v4216_v48 = vld [vmem:[#allocation5 + $0x360] ss:$16 sps:$4 sm:$0xff]   ;;  %v4274_v24 = vld [vmem:[#allocation5 + $0x88] ss:$16 sps:$4 sm:$0xff]  }
  0x65   :  { %1609 = vmatprep.subr.bf16.mxu0 %v4183_v26  ;;  %v4217_v49 = vld [vmem:[#allocation5 + $0x184] ss:$16 sps:$4 sm:$0xff]   ;;  %v4221_v53 = vld [vmem:[#allocation5 + $0x180] ss:$16 sps:$4 sm:$0xff]   ;;  %v4282_v26 = vld [vmem:[#allocation5 + $0xac] ss:$16 sps:$4 sm:$0xff]  }
  0x66   :  { %v5016_v50 = vld [vmem:[#allocation3 + $0x4] ss:$28 sps:$4 sm:$0xff]  }
  0x67   :  { %1557 = vmatpush1.bf16.msra.mxu1 %v4185_v27  ;;  %v4219_v51 = vld [vmem:[#allocation5 + $0x384] ss:$16 sps:$4 sm:$0xff]   ;;  %1576 = vmatprep.mubr.bf16.mxu1 %v5016_v50  ;;  %v4222_v54 = vld [vmem:[#allocation5 + $0x380] ss:$16 sps:$4 sm:$0xff]  }
  0x68   :  { %1610 = vmatpush1.bf16.msra.mxu0 %v4186_v28  ;;  %1558 = vmatprep.subr.bf16.mxu1 %v4187_v29  ;;  %v4223_v55 = vld [vmem:[#allocation5 + $0x1a4] ss:$16 sps:$4 sm:$0xff]   ;;  %v4227_v57 = vld [vmem:[#allocation5 + $0x1a0] ss:$16 sps:$4 sm:$0xff]   ;;  %v4280_v28 = vld [vmem:[#allocation5 + $0xa8] ss:$16 sps:$4 sm:$0xff]  }
  0x69   :  { %1611 = vmatprep.subr.bf16.mxu0 %v4189_v30  ;;  %v4225_v56 = vld [vmem:[#allocation5 + $0x3a4] ss:$16 sps:$4 sm:$0xff]   ;;  %v4228_v58 = vld [vmem:[#allocation5 + $0x3a0] ss:$16 sps:$4 sm:$0xff]   ;;  %v5028_v30 = vld [vmem:[#allocation3 + $0x3c] ss:$28 sps:$4 sm:$0xff]  }
  0x6a   :  { %v4229_v59 = vld [vmem:[#allocation5 + $0x1c4] ss:$16 sps:$4 sm:$0xff]   ;;  %v4233_v61 = vld [vmem:[#allocation5 + $0x1c0] ss:$16 sps:$4 sm:$0xff]  }
  0x6b   :  { %1559 = vmatpush1.bf16.msra.mxu1 %v4191_v31  ;;  %v4231_v60 = vld [vmem:[#allocation5 + $0x3c4] ss:$16 sps:$4 sm:$0xff]   ;;  %v4234_v62 = vld [vmem:[#allocation5 + $0x3c0] ss:$16 sps:$4 sm:$0xff]  }
  0x6c   :  { %1612 = vmatpush1.bf16.msra.mxu0 %v4192_v32  ;;  %1560 = vmatprep.subr.bf16.mxu1 %v4193_v33  ;;  %v4235_v63 = vld [vmem:[#allocation5 + $0x1e4] ss:$16 sps:$4 sm:$0xff]   ;;  %v4239_v1 = vld [vmem:[#allocation5 + $0x1e0] ss:$16 sps:$4 sm:$0xff]   ;;  %v4288_v33 = vld [vmem:[#allocation5 + $0xcc] ss:$16 sps:$4 sm:$0xff]  }
  0x6d   :  { %1613 = vmatprep.subr.bf16.mxu0 %v4195_v34  ;;  %v4237_v0 = vld [vmem:[#allocation5 + $0x3e4] ss:$16 sps:$4 sm:$0xff]   ;;  %v4240_v2 = vld [vmem:[#allocation5 + $0x3e0] ss:$16 sps:$4 sm:$0xff]  }
  0x6e   :  { %v4249_v3 = vld [vmem:[#allocation5 + $0x404] ss:$16 sps:$4 sm:$0xff]   ;;  %v5022_v5 = vld [vmem:[#allocation3] ss:$28 sps:$4 sm:$0xff]  }
  0x6f   :  { %1561 = vmatpush1.bf16.msra.mxu1 %v4197_v35  ;;  %v5024_v6 = vld [vmem:[#allocation3 + $0x8] ss:$28 sps:$4 sm:$0xff]   ;;  %v4247_v7 = vld [vmem:[#allocation5 + $0x400] ss:$16 sps:$4 sm:$0xff]   ;;  %v5030_v31 = vld [vmem:[#allocation3 + $0x38] ss:$28 sps:$4 sm:$0xff]  }
  0x70   :  { %1614 = vmatpush1.bf16.msra.mxu0 %v4198_v36  ;;  %1562 = vmatprep.subr.bf16.mxu1 %v4199_v37  ;;  %v4255_v9 = vld [vmem:[#allocation5 + $0x424] ss:$16 sps:$4 sm:$0xff]   ;;  %v4253_v11 = vld [vmem:[#allocation5 + $0x420] ss:$16 sps:$4 sm:$0xff]   ;;  %v4286_v35 = vld [vmem:[#allocation5 + $0xc8] ss:$16 sps:$4 sm:$0xff]  }
  0x71   :  { %1615 = vmatprep.subr.bf16.mxu0 %v4201_v38  ;;  %v4261_v13 = vld [vmem:[#allocation5 + $0x444] ss:$16 sps:$4 sm:$0xff]   ;;  %v4259_v15 = vld [vmem:[#allocation5 + $0x440] ss:$16 sps:$4 sm:$0xff]   ;;  %v4294_v38 = vld [vmem:[#allocation5 + $0xec] ss:$16 sps:$4 sm:$0xff]  }
  0x72   :  { %v4267_v17 = vld [vmem:[#allocation5 + $0x464] ss:$16 sps:$4 sm:$0xff]   ;;  %v4265_v19 = vld [vmem:[#allocation5 + $0x460] ss:$16 sps:$4 sm:$0xff]  }
  0x73   :  { %1563 = vmatpush1.bf16.msra.mxu1 %v4203_v39  ;;  %v4273_v21 = vld [vmem:[#allocation5 + $0x484] ss:$16 sps:$4 sm:$0xff]   ;;  %v4271_v23 = vld [vmem:[#allocation5 + $0x480] ss:$16 sps:$4 sm:$0xff]  }
  0x74   :  { %1616 = vmatpush1.bf16.msra.mxu0 %v4204_v40  ;;  %1564 = vmatprep.subr.bf16.mxu1 %v4205_v41  ;;  %v4279_v25 = vld [vmem:[#allocation5 + $0x4a4] ss:$16 sps:$4 sm:$0xff]   ;;  %v4277_v27 = vld [vmem:[#allocation5 + $0x4a0] ss:$16 sps:$4 sm:$0xff]   ;;  %v4292_v40 = vld [vmem:[#allocation5 + $0xe8] ss:$16 sps:$4 sm:$0xff]  }
  0x75   :  { %1617 = vmatprep.subr.bf16.mxu0 %v4207_v42  ;;  %v4285_v29 = vld [vmem:[#allocation5 + $0x4c4] ss:$16 sps:$4 sm:$0xff]   ;;  %v4283_v34 = vld [vmem:[#allocation5 + $0x4c0] ss:$16 sps:$4 sm:$0xff]  }
  0x76   :  { %v5032_v32 = vld [vmem:[#allocation3 + $0x44] ss:$28 sps:$4 sm:$0xff]   ;;  %v5041_v41 = vld [vmem:[#allocation3 + $0x14] ss:$28 sps:$4 sm:$0xff]  }
  0x77   :  { %1565 = vmatpush1.bf16.msra.mxu1 %v4209_v43  ;;  %v5037_v36 = vld [vmem:[#allocation3 + $0x40] ss:$28 sps:$4 sm:$0xff]   ;;  %v4291_v37 = vld [vmem:[#allocation5 + $0x4e4] ss:$16 sps:$4 sm:$0xff]  }
  0x78   :  { %1618 = vmatpush1.bf16.msra.mxu0 %v4210_v44  ;;  %1566 = vmatprep.subr.bf16.mxu1 %v4211_v45  ;;  %v4289_v39 = vld [vmem:[#allocation5 + $0x4e0] ss:$16 sps:$4 sm:$0xff]   ;;  %v4297_v42 = vld [vmem:[#allocation5 + $0x504] ss:$16 sps:$4 sm:$0xff]   ;;  %v4300_v43 = vld [vmem:[#allocation5 + $0x10c] ss:$16 sps:$4 sm:$0xff]  }
  0x79   :  { %1619 = vmatprep.subr.bf16.mxu0 %v4213_v46  ;;  %v4295_v44 = vld [vmem:[#allocation5 + $0x500] ss:$16 sps:$4 sm:$0xff]   ;;  %v4298_v45 = vld [vmem:[#allocation5 + $0x108] ss:$16 sps:$4 sm:$0xff]   ;;  %v4303_v46 = vld [vmem:[#allocation5 + $0x524] ss:$16 sps:$4 sm:$0xff]  }
  0x7b   :  { %1567 = vmatpush1.bf16.msra.mxu1 %v4215_v47  ;;  %v4306_v47 = vld [vmem:[#allocation5 + $0x12c] ss:$16 sps:$4 sm:$0xff]  }
  0x7c   :  { %1620 = vmatpush1.bf16.msra.mxu0 %v4216_v48  ;;  %1568 = vmatprep.subr.bf16.mxu1 %v4217_v49  ;;  %v4301_v48 = vld [vmem:[#allocation5 + $0x520] ss:$16 sps:$4 sm:$0xff]   ;;  %v4304_v49 = vld [vmem:[#allocation5 + $0x128] ss:$16 sps:$4 sm:$0xff]  }
  0x7d   :  { %1621 = vmatprep.subr.bf16.mxu0 %v4219_v51  ;;  %v4312_v51 = vld [vmem:[#allocation5 + $0x14c] ss:$16 sps:$4 sm:$0xff]  }
  0x7f   :  { %1569 = vmatpush1.bf16.msra.mxu1 %v4221_v53  ;;  %v4307_v53 = vld [vmem:[#allocation5 + $0x540] ss:$16 sps:$4 sm:$0xff]  }
  0x80   :  { %1622 = vmatpush1.bf16.msra.mxu0 %v4222_v54  ;;  %1570 = vmatprep.subr.bf16.mxu1 %v4223_v55  ;;  %v4310_v54 = vld [vmem:[#allocation5 + $0x148] ss:$16 sps:$4 sm:$0xff]   ;;  %v4315_v55 = vld [vmem:[#allocation5 + $0x564] ss:$16 sps:$4 sm:$0xff]  }
  0x81   :  { %1623 = vmatprep.subr.bf16.mxu0 %v4225_v56  ;;  %v4318_v56 = vld [vmem:[#allocation5 + $0x16c] ss:$16 sps:$4 sm:$0xff]  }
  0x83   :  { %1571 = vmatpush1.bf16.msra.mxu1 %v4227_v57  ;;  %v4313_v57 = vld [vmem:[#allocation5 + $0x560] ss:$16 sps:$4 sm:$0xff]  }
  0x84   :  { %1624 = vmatpush1.bf16.msra.mxu0 %v4228_v58  ;;  %1572 = vmatprep.subr.bf16.mxu1 %v4229_v59  ;;  %v4316_v58 = vld [vmem:[#allocation5 + $0x168] ss:$16 sps:$4 sm:$0xff]   ;;  %v4321_v59 = vld [vmem:[#allocation5 + $0x584] ss:$16 sps:$4 sm:$0xff]  }
  0x85   :  { %1625 = vmatprep.subr.bf16.mxu0 %v4231_v60  ;;  %v4324_v60 = vld [vmem:[#allocation5 + $0x18c] ss:$16 sps:$4 sm:$0xff]  }
  0x87   :  { %1573 = vmatpush1.bf16.msra.mxu1 %v4233_v61  ;;  %v4319_v61 = vld [vmem:[#allocation5 + $0x580] ss:$16 sps:$4 sm:$0xff]  }
  0x88   :  { %1626 = vmatpush1.bf16.msra.mxu0 %v4234_v62  ;;  %1574 = vmatprep.subr.bf16.mxu1 %v4235_v63  ;;  %v4322_v62 = vld [vmem:[#allocation5 + $0x188] ss:$16 sps:$4 sm:$0xff]   ;;  %v4327_v63 = vld [vmem:[#allocation5 + $0x5a4] ss:$16 sps:$4 sm:$0xff]  }
  0x89   :  { %1627 = vmatprep.subr.bf16.mxu0 %v4237_v0  ;;  %v4330_v0 = vld [vmem:[#allocation5 + $0x1ac] ss:$16 sps:$4 sm:$0xff]  }
  0x8b   :  { %1575 = vmatpush1.bf16.msra.mxu1 %v4239_v1  ;;  %v4325_v1 = vld [vmem:[#allocation5 + $0x5a0] ss:$16 sps:$4 sm:$0xff]  }
  0x8c   :  { %1628 = vmatpush1.bf16.msra.mxu0 %v4240_v2  ;;  %1756 = vmatprep.subr.bf16.mxu1 %v4252_v4  ;;  %v4328_v2 = vld [vmem:[#allocation5 + $0x1a8] ss:$16 sps:$4 sm:$0xff]   ;;  %v4341_v4 = vld [vmem:[#allocation5 + $0x1cc] ss:$16 sps:$4 sm:$0xff]  }
  0x8d   :  { %1650 = vmatprep.subr.bf16.mxu0 %v4249_v3  ;;  %v4338_v3 = vld [vmem:[#allocation5 + $0x5c4] ss:$16 sps:$4 sm:$0xff]  }
  0x8e   :  { %1577 = vmatmul.mubr.bf16.vlgmr.msra.gmra.mrb[0].mxu1 %v5022_v5 }
  0x8f   :  { %1630 = vmatmul.mubr.bf16.vlgmr.msra.gmra.mrb[0].mxu0 %v5024_v6  ;;  %1757 = vmatpush1.bf16.msra.mxu1 %v4250_v8  ;;  %v4339_v8 = vld [vmem:[#allocation5 + $0x1c8] ss:$16 sps:$4 sm:$0xff]  }
  0x90   :  { %1651 = vmatpush1.bf16.msra.mxu0 %v4247_v7  ;;  %1758 = vmatprep.subr.bf16.mxu1 %v4258_v10  ;;  %v4336_v7 = vld [vmem:[#allocation5 + $0x5c0] ss:$16 sps:$4 sm:$0xff]   ;;  %v4348_v10 = vld [vmem:[#allocation5 + $0x1ec] ss:$16 sps:$4 sm:$0xff]  }
  0x91   :  { %1652 = vmatprep.subr.bf16.mxu0 %v4255_v9  ;;  %1586 = vmatprep.mubr.bf16.mxu1 %v5028_v30  ;;  %v4345_v9 = vld [vmem:[#allocation5 + $0x5e4] ss:$16 sps:$4 sm:$0xff]  }
  0x92   :  { %1639 = vmatprep.mubr.bf16.mxu0 %v5032_v32 }
  0x93   :  { %1759 = vmatpush1.bf16.msra.mxu1 %v4256_v12  ;;  %v4346_v12 = vld [vmem:[#allocation5 + $0x1e8] ss:$16 sps:$4 sm:$0xff]  }
  0x94   :  { %1653 = vmatpush1.bf16.msra.mxu0 %v4253_v11  ;;  %1760 = vmatprep.subr.bf16.mxu1 %v4264_v14  ;;  %v4343_v11 = vld [vmem:[#allocation5 + $0x5e0] ss:$16 sps:$4 sm:$0xff]   ;;  %v4357_v14 = vld [vmem:[#allocation5 + $0x20c] ss:$16 sps:$4 sm:$0xff]  }
  0x95   :  { %1654 = vmatprep.subr.bf16.mxu0 %v4261_v13  ;;  %v4354_v13 = vld [vmem:[#allocation5 + $0x604] ss:$16 sps:$4 sm:$0xff]  }
  0x96   :  { %1587 = vmatmul.mubr.bf16.gmra.mrb[4].mxu1 %v5030_v31 }
  0x97   :  { %1761 = vmatpush1.bf16.msra.mxu1 %v4262_v16  ;;  %1640 = vmatmul.mubr.bf16.gmra.mrb[4].mxu0 %v5037_v36  ;;  %v4352_v16 = vld [vmem:[#allocation5 + $0x600] ss:$16 sps:$4 sm:$0xff]  }
  0x98   :  { %1655 = vmatpush1.bf16.msra.mxu0 %v4259_v15  ;;  %1762 = vmatprep.subr.bf16.mxu1 %v4270_v18  ;;  %v5044_v15 = vld [vmem:[#allocation3 + $0x10] ss:$28 sps:$4 sm:$0xff]   ;;  %v4360_v18 = vld [vmem:[#allocation5 + $0x624] ss:$16 sps:$4 sm:$0xff]  }
  0x99   :  { %1656 = vmatprep.subr.bf16.mxu0 %v4267_v17  ;;  %1788 = vmatprep.mubr.bf16.mxu1 %v5016_v50  ;;  %v4309_v50 = vld [vmem:[#allocation5 + $0x544] ss:$16 sps:$4 sm:$0xff]   ;;  %v4355_v17 = vld [vmem:[#allocation5 + $0x208] ss:$16 sps:$4 sm:$0xff]  }
  0x9a   :  { %1682 = vmatprep.mubr.bf16.mxu0 %v5041_v41 }
  0x9b   :  { %1763 = vmatpush1.bf16.msra.mxu1 %v4268_v20  ;;  %v5046_v20 = vld [vmem:[#allocation3 + $0x4c] ss:$28 sps:$4 sm:$0xff]  }
  0x9c   :  { %1657 = vmatpush1.bf16.msra.mxu0 %v4265_v19  ;;  %1764 = vmatprep.subr.bf16.mxu1 %v4276_v22  ;;  %v4363_v19 = vld [vmem:[#allocation5 + $0x22c] ss:$16 sps:$4 sm:$0xff]   ;;  %v4361_v22 = vld [vmem:[#allocation5 + $0x228] ss:$16 sps:$4 sm:$0xff]  }
  0x9d   :  { %1658 = vmatprep.subr.bf16.mxu0 %v4273_v21  ;;  %v4358_v21 = vld [vmem:[#allocation5 + $0x620] ss:$16 sps:$4 sm:$0xff]  }
  0x9f   :  { %1765 = vmatpush1.bf16.msra.mxu1 %v4274_v24  ;;  %v4369_v24 = vld [vmem:[#allocation5 + $0x24c] ss:$16 sps:$4 sm:$0xff]  }
  0xa0   :  { %1659 = vmatpush1.bf16.msra.mxu0 %v4271_v23  ;;  %1766 = vmatprep.subr.bf16.mxu1 %v4282_v26  ;;  %v4366_v23 = vld [vmem:[#allocation5 + $0x644] ss:$16 sps:$4 sm:$0xff]   ;;  %v4364_v26 = vld [vmem:[#allocation5 + $0x640] ss:$16 sps:$4 sm:$0xff]  }
  0xa1   :  { %1660 = vmatprep.subr.bf16.mxu0 %v4279_v25  ;;  %v5052_v25 = vld [vmem:[#allocation3 + $0x48] ss:$28 sps:$4 sm:$0xff]  }
  0xa3   :  { %1767 = vmatpush1.bf16.msra.mxu1 %v4280_v28  ;;  %v4375_v28 = vld [vmem:[#allocation5 + $0x26c] ss:$16 sps:$4 sm:$0xff]  }
  0xa4   :  { %1661 = vmatpush1.bf16.msra.mxu0 %v4277_v27  ;;  %1768 = vmatprep.subr.bf16.mxu1 %v4288_v33  ;;  %v4367_v27 = vld [vmem:[#allocation5 + $0x248] ss:$16 sps:$4 sm:$0xff]  }
  0xa5   :  { %1662 = vmatprep.subr.bf16.mxu0 %v4285_v29  ;;  %v4370_v29 = vld [vmem:[#allocation5 + $0x660] ss:$16 sps:$4 sm:$0xff]   ;;  %v4373_v33 = vld [vmem:[#allocation5 + $0x268] ss:$16 sps:$4 sm:$0xff]  }
  0xa7   :  { %1769 = vmatpush1.bf16.msra.mxu1 %v4286_v35  ;;  %v4901_v35 = vmov 0  }
  0xa8   :  { %1663 = vmatpush1.bf16.msra.mxu0 %v4283_v34  ;;  %1770 = vmatprep.subr.bf16.mxu1 %v4294_v38  ;;  %v4381_v34 = vld [vmem:[#allocation5 + $0x28c] ss:$16 sps:$4 sm:$0xff]   ;;  %v4379_v38 = vld [vmem:[#allocation5 + $0x288] ss:$16 sps:$4 sm:$0xff]  }
  0xa9   :  { %1664 = vmatprep.subr.bf16.mxu0 %v4291_v37  ;;  %v4376_v37 = vld [vmem:[#allocation5 + $0x680] ss:$16 sps:$4 sm:$0xff]  }
  0xab   :  { %1771 = vmatpush1.bf16.msra.mxu1 %v4292_v40  ;;  %v4382_v40 = vld [vmem:[#allocation5 + $0x6a0] ss:$16 sps:$4 sm:$0xff]  }
  0xac   :  { %1665 = vmatpush1.bf16.msra.mxu0 %v4289_v39  ;;  %1772 = vmatprep.subr.bf16.mxu1 %v4300_v43  ;;  %v4387_v39 = vld [vmem:[#allocation5 + $0x2ac] ss:$16 sps:$4 sm:$0xff]   ;;  %v4393_v43 = vld [vmem:[#allocation5 + $0x6c4] ss:$16 sps:$4 sm:$0xff]  }
  0xad   :  { %1666 = vmatprep.subr.bf16.mxu0 %v4297_v42  ;;  %v4385_v42 = vld [vmem:[#allocation5 + $0x2a8] ss:$16 sps:$4 sm:$0xff]  }
  0xaf   :  { %1773 = vmatpush1.bf16.msra.mxu1 %v4298_v45  ;;  %v4391_v45 = vld [vmem:[#allocation5 + $0x6c0] ss:$16 sps:$4 sm:$0xff]  }
  0xb0   :  { %1667 = vmatpush1.bf16.msra.mxu0 %v4295_v44  ;;  %1774 = vmatprep.subr.bf16.mxu1 %v4306_v47  ;;  %v4396_v44 = vld [vmem:[#allocation5 + $0x2cc] ss:$16 sps:$4 sm:$0xff]  }
  0xb1   :  { %1668 = vmatprep.subr.bf16.mxu0 %v4303_v46  ;;  %v4399_v46 = vld [vmem:[#allocation5 + $0x6e4] ss:$16 sps:$4 sm:$0xff]   ;;  %v4402_v47 = vld [vmem:[#allocation5 + $0x2ec] ss:$16 sps:$4 sm:$0xff]  }
  0xb3   :  { %1775 = vmatpush1.bf16.msra.mxu1 %v4304_v49  ;;  %v4400_v49 = vld [vmem:[#allocation5 + $0x2e8] ss:$16 sps:$4 sm:$0xff]  }
  0xb4   :  { %1669 = vmatpush1.bf16.msra.mxu0 %v4301_v48  ;;  %1776 = vmatprep.subr.bf16.mxu1 %v4312_v51  ;;  %v4397_v48 = vld [vmem:[#allocation5 + $0x6e0] ss:$16 sps:$4 sm:$0xff]   ;;  %v5058_v51 = vld [vmem:[#allocation3 + $0x18] ss:$28 sps:$4 sm:$0xff]  }
  0xb5   :  { %1670 = vmatprep.subr.bf16.mxu0 %v4309_v50  ;;  %v4406_v50 = vld [vmem:[#allocation5 + $0x30c] ss:$16 sps:$4 sm:$0xff]  }
  0xb7   :  { %1777 = vmatpush1.bf16.msra.mxu1 %v4310_v54  ;;  %v4409_v54 = vld [vmem:[#allocation5 + $0x32c] ss:$16 sps:$4 sm:$0xff]  }
  0xb8   :  { %1671 = vmatpush1.bf16.msra.mxu0 %v4307_v53  ;;  %1778 = vmatprep.subr.bf16.mxu1 %v4318_v56  ;;  %v4404_v53 = vld [vmem:[#allocation5 + $0x308] ss:$16 sps:$4 sm:$0xff]   ;;  %v4413_v56 = vld [vmem:[#allocation5 + $0x34c] ss:$16 sps:$4 sm:$0xff]  }
  0xb9   :  { %1672 = vmatprep.subr.bf16.mxu0 %v4315_v55  ;;  %v4407_v55 = vld [vmem:[#allocation5 + $0x328] ss:$16 sps:$4 sm:$0xff]  }
  0xbb   :  { %1779 = vmatpush1.bf16.msra.mxu1 %v4316_v58  ;;  %v4411_v58 = vld [vmem:[#allocation5 + $0x348] ss:$16 sps:$4 sm:$0xff]  }
  0xbc   :  { %1673 = vmatpush1.bf16.msra.mxu0 %v4313_v57  ;;  %1780 = vmatprep.subr.bf16.mxu1 %v4324_v60  ;;  %v5062_v57 = vld [vmem:[#allocation3 + $0x50] ss:$28 sps:$4 sm:$0xff]  }
  0xbd   :  { %1674 = vmatprep.subr.bf16.mxu0 %v4321_v59  ;;  %v4416_v59 = vld [vmem:[#allocation5 + $0x36c] ss:$16 sps:$4 sm:$0xff]   ;;  %v4501_v60 = vld [vmem:[#allocation7] ss:$16 sps:$4 sm:$0xff]  }
  0xbf   :  { %1781 = vmatpush1.bf16.msra.mxu1 %v4322_v62  ;;  %v4414_v62 = vld [vmem:[#allocation5 + $0x368] ss:$16 sps:$4 sm:$0xff]  }
  0xc0   :  { %1675 = vmatpush1.bf16.msra.mxu0 %v4319_v61  ;;  %1782 = vmatprep.subr.bf16.mxu1 %v4330_v0  ;;  %v4503_v61 = vld [vmem:[#allocation7 + $0x4] ss:$16 sps:$4 sm:$0xff]   ;;  %v4419_v0 = vld [vmem:[#allocation5 + $0x38c] ss:$16 sps:$4 sm:$0xff]  }
  0xc1   :  { %1676 = vmatprep.subr.bf16.mxu0 %v4327_v63  ;;  %v4509_v63 = vld [vmem:[#allocation7 + $0x24] ss:$16 sps:$4 sm:$0xff]  }
  0xc3   :  { %1783 = vmatpush1.bf16.msra.mxu1 %v4328_v2  ;;  %v4515_v2 = vld [vmem:[#allocation7 + $0x44] ss:$16 sps:$4 sm:$0xff]  }
  0xc4   :  { %1677 = vmatpush1.bf16.msra.mxu0 %v4325_v1  ;;  %1784 = vmatprep.subr.bf16.mxu1 %v4341_v4  ;;  %v4507_v1 = vld [vmem:[#allocation7 + $0x20] ss:$16 sps:$4 sm:$0xff]   ;;  %v4422_v4 = vld [vmem:[#allocation5 + $0x3ac] ss:$16 sps:$4 sm:$0xff]  }
  0xc5   :  { %1678 = vmatprep.subr.bf16.mxu0 %v4338_v3  ;;  %v4417_v3 = vld [vmem:[#allocation5 + $0x388] ss:$16 sps:$4 sm:$0xff]  }
  0xc7   :  { %1785 = vmatpush1.bf16.msra.mxu1 %v4339_v8  ;;  %v4521_v8 = vld [vmem:[#allocation7 + $0x64] ss:$16 sps:$4 sm:$0xff]  }
  0xc8   :  { %1679 = vmatpush1.bf16.msra.mxu0 %v4336_v7  ;;  %1786 = vmatprep.subr.bf16.mxu1 %v4348_v10  ;;  %v4513_v7 = vld [vmem:[#allocation7 + $0x40] ss:$16 sps:$4 sm:$0xff]   ;;  %v4425_v10 = vld [vmem:[#allocation5 + $0x3cc] ss:$16 sps:$4 sm:$0xff]  }
  0xc9   :  { %1680 = vmatprep.subr.bf16.mxu0 %v4345_v9  ;;  %v4420_v9 = vld [vmem:[#allocation5 + $0x3a8] ss:$16 sps:$4 sm:$0xff]  }
  0xcb   :  { %1787 = vmatpush1.bf16.msra.mxu1 %v4346_v12  ;;  %v4527_v12 = vld [vmem:[#allocation7 + $0x84] ss:$16 sps:$4 sm:$0xff]  }
  0xcc   :  { %1681 = vmatpush1.bf16.msra.mxu0 %v4343_v11  ;;  %1809 = vmatprep.subr.bf16.mxu1 %v4357_v14  ;;  %v4519_v11 = vld [vmem:[#allocation7 + $0x60] ss:$16 sps:$4 sm:$0xff]   ;;  %v4428_v14 = vld [vmem:[#allocation5 + $0x3ec] ss:$16 sps:$4 sm:$0xff]  }
  0xcd   :  { %1703 = vmatprep.subr.bf16.mxu0 %v4354_v13  ;;  %v4423_v13 = vld [vmem:[#allocation5 + $0x3c8] ss:$16 sps:$4 sm:$0xff]  }
  0xce   :  { %1789 = vmatmul.mubr.bf16.vlgmr.msra.gmra.mrb[8].mxu1 %v5022_v5  ;;  %v4372_v5 = vld [vmem:[#allocation5 + $0x664] ss:$16 sps:$4 sm:$0xff]  }
  0xcf   :  { %1683 = vmatmul.mubr.bf16.vlgmr.msra.gmra.mrb[0].mxu0 %v5044_v15  ;;  %1810 = vmatpush1.bf16.msra.mxu1 %v4355_v17  ;;  %v4533_v17 = vld [vmem:[#allocation7 + $0xa4] ss:$16 sps:$4 sm:$0xff]  }
  0xd0   :  { %1704 = vmatpush1.bf16.msra.mxu0 %v4352_v16  ;;  %1811 = vmatprep.subr.bf16.mxu1 %v4363_v19  ;;  %v4525_v16 = vld [vmem:[#allocation7 + $0x80] ss:$16 sps:$4 sm:$0xff]   ;;  %v4431_v19 = vld [vmem:[#allocation5 + $0x40c] ss:$16 sps:$4 sm:$0xff]  }
  0xd1   :  { %1705 = vmatprep.subr.bf16.mxu0 %v4360_v18  ;;  %1692 = vmatprep.mubr.bf16.mxu0 %v5046_v20  ;;  %v4426_v18 = vld [vmem:[#allocation5 + $0x3e8] ss:$16 sps:$4 sm:$0xff]  }
  0xd2   :  { %1798 = vmatprep.mubr.bf16.mxu1 %v5028_v30  ;;  %v4378_v30 = vld [vmem:[#allocation5 + $0x684] ss:$16 sps:$4 sm:$0xff]  }
  0xd3   :  { %1812 = vmatpush1.bf16.msra.mxu1 %v4361_v22  ;;  %v4539_v22 = vld [vmem:[#allocation7 + $0xc4] ss:$16 sps:$4 sm:$0xff]  }
  0xd4   :  { %1706 = vmatpush1.bf16.msra.mxu0 %v4358_v21  ;;  %1813 = vmatprep.subr.bf16.mxu1 %v4369_v24  ;;  %v4531_v21 = vld [vmem:[#allocation7 + $0xa0] ss:$16 sps:$4 sm:$0xff]   ;;  %v4434_v24 = vld [vmem:[#allocation5 + $0x42c] ss:$16 sps:$4 sm:$0xff]  }
  0xd5   :  { %1707 = vmatprep.subr.bf16.mxu0 %v4366_v23  ;;  %v4429_v23 = vld [vmem:[#allocation5 + $0x408] ss:$16 sps:$4 sm:$0xff]  }
  0xd6   :  { %1799 = vmatmul.mubr.bf16.gmra.mrb[12].mxu1 %v5030_v31  ;;  %v4384_v31 = vld [vmem:[#allocation5 + $0x6a4] ss:$16 sps:$4 sm:$0xff]  }
  0xd7   :  { %1693 = vmatmul.mubr.bf16.gmra.mrb[4].mxu0 %v5052_v25  ;;  %1814 = vmatpush1.bf16.msra.mxu1 %v4367_v27  ;;  %v4545_v27 = vld [vmem:[#allocation7 + $0xe4] ss:$16 sps:$4 sm:$0xff]  }
  0xd8   :  { %1708 = vmatpush1.bf16.msra.mxu0 %v4364_v26  ;;  %1815 = vmatprep.subr.bf16.mxu1 %v4375_v28  ;;  %v4537_v26 = vld [vmem:[#allocation7 + $0xc0] ss:$16 sps:$4 sm:$0xff]   ;;  %v4437_v28 = vld [vmem:[#allocation5 + $0x44c] ss:$16 sps:$4 sm:$0xff]  }
  0xd9   :  { %1709 = vmatprep.subr.bf16.mxu0 %v4372_v5  ;;  %1735 = vmatprep.mubr.bf16.mxu0 %v4901_v35  ;;  %v4432_v5 = vld [vmem:[#allocation5 + $0x428] ss:$16 sps:$4 sm:$0xff]  }
  0xda   :  { %1841 = vmatprep.mubr.bf16.mxu1 %v5018_v52  ;;  %v4394_v52 = vld [vmem:[#allocation5 + $0x2c8] ss:$16 sps:$4 sm:$0xff]  }
  0xdb   :  { %1816 = vmatpush1.bf16.msra.mxu1 %v4373_v33  ;;  %v4551_v33 = vld [vmem:[#allocation7 + $0x104] ss:$16 sps:$4 sm:$0xff]  }
  0xdc   :  { %1710 = vmatpush1.bf16.msra.mxu0 %v4370_v29  ;;  %1817 = vmatprep.subr.bf16.mxu1 %v4381_v34  ;;  %v4543_v29 = vld [vmem:[#allocation7 + $0xe0] ss:$16 sps:$4 sm:$0xff]   ;;  %v4440_v34 = vld [vmem:[#allocation5 + $0x46c] ss:$16 sps:$4 sm:$0xff]  }
  0xdd   :  { %1711 = vmatprep.subr.bf16.mxu0 %v4378_v30  ;;  %v4435_v30 = vld [vmem:[#allocation5 + $0x448] ss:$16 sps:$4 sm:$0xff]  }
  0xdf   :  { %1818 = vmatpush1.bf16.msra.mxu1 %v4379_v38  ;;  %v4557_v38 = vld [vmem:[#allocation7 + $0x124] ss:$16 sps:$4 sm:$0xff]  }
  0xe0   :  { %1712 = vmatpush1.bf16.msra.mxu0 %v4376_v37  ;;  %1819 = vmatprep.subr.bf16.mxu1 %v4387_v39  ;;  %v4549_v37 = vld [vmem:[#allocation7 + $0x100] ss:$16 sps:$4 sm:$0xff]   ;;  %v4563_v39 = vld [vmem:[#allocation7 + $0x144] ss:$16 sps:$4 sm:$0xff]  }
  0xe1   :  { %1713 = vmatprep.subr.bf16.mxu0 %v4384_v31  ;;  %v4443_v31 = vld [vmem:[#allocation5 + $0x48c] ss:$16 sps:$4 sm:$0xff]  }
  0xe3   :  { %1820 = vmatpush1.bf16.msra.mxu1 %v4385_v42  ;;  %v4446_v42 = vld [vmem:[#allocation5 + $0x4ac] ss:$16 sps:$4 sm:$0xff]  }
  0xe4   :  { %1714 = vmatpush1.bf16.msra.mxu0 %v4382_v40  ;;  %1821 = vmatprep.subr.bf16.mxu1 %v4396_v44  ;;  %v4441_v40 = vld [vmem:[#allocation5 + $0x488] ss:$16 sps:$4 sm:$0xff]   ;;  %v4569_v44 = vld [vmem:[#allocation7 + $0x164] ss:$16 sps:$4 sm:$0xff]  }
  0xe5   :  { %1715 = vmatprep.subr.bf16.mxu0 %v4393_v43  ;;  %v4561_v43 = vld [vmem:[#allocation7 + $0x140] ss:$16 sps:$4 sm:$0xff]  }
  0xe7   :  { %1822 = vmatpush1.bf16.msra.mxu1 %v4394_v52  ;;  %v4567_v52 = vld [vmem:[#allocation7 + $0x160] ss:$16 sps:$4 sm:$0xff]  }
  0xe8   :  { %1716 = vmatpush1.bf16.msra.mxu0 %v4391_v45  ;;  %1823 = vmatprep.subr.bf16.mxu1 %v4402_v47  ;;  %v4449_v45 = vld [vmem:[#allocation5 + $0x4cc] ss:$16 sps:$4 sm:$0xff]  }
  0xe9   :  { %1717 = vmatprep.subr.bf16.mxu0 %v4399_v46  ;;  %v4575_v46 = vld [vmem:[#allocation7 + $0x184] ss:$16 sps:$4 sm:$0xff]   ;;  %v4452_v47 = vld [vmem:[#allocation5 + $0x4ec] ss:$16 sps:$4 sm:$0xff]  }
  0xeb   :  { %1824 = vmatpush1.bf16.msra.mxu1 %v4400_v49  ;;  %v4581_v49 = vld [vmem:[#allocation7 + $0x1a4] ss:$16 sps:$4 sm:$0xff]  }
  0xec   :  { %1718 = vmatpush1.bf16.msra.mxu0 %v4397_v48  ;;  %1825 = vmatprep.subr.bf16.mxu1 %v4406_v50  ;;  %v4573_v48 = vld [vmem:[#allocation7 + $0x180] ss:$16 sps:$4 sm:$0xff]   ;;  %v4450_v50 = vld [vmem:[#allocation5 + $0x4e8] ss:$16 sps:$4 sm:$0xff]  }
  0xed   :  { %2782 = vmatprep.subr.bf16.mxu0 %v4503_v61  ;;  %v4464_v61 = vld [vmem:[#allocation5 + $0x56c] ss:$16 sps:$4 sm:$0xff]  }
  0xef   :  { %1736 = vmatmul.mubr.bf16.vlgmr.msra.gmra.mrb[0].mxu0 %v5058_v51  ;;  %1826 = vmatpush1.bf16.msra.mxu1 %v4404_v53  ;;  %v4455_v53 = vld [vmem:[#allocation5 + $0x50c] ss:$16 sps:$4 sm:$0xff]  }
  0xf0   :  { %1745 = vmatprep.mubr.bf16.mxu0 %v4901_v35  ;;  %1827 = vmatprep.subr.bf16.mxu1 %v4409_v54  ;;  %v4579_v54 = vld [vmem:[#allocation7 + $0x1a0] ss:$16 sps:$4 sm:$0xff]  }
  0xf1   :  { %2783 = vmatpush1.bf16.msra.mxu0 %v4501_v60  ;;  %v4459_v60 = vld [vmem:[#allocation5 + $0x548] ss:$16 sps:$4 sm:$0xff]  }
  0xf2   :  { %2784 = vmatprep.subr.bf16.mxu0 %v4509_v63  ;;  %v4467_v63 = vld [vmem:[#allocation5 + $0x58c] ss:$16 sps:$4 sm:$0xff]  }
  0xf3   :  { %1828 = vmatpush1.bf16.msra.mxu1 %v4407_v55  ;;  %v4453_v55 = vld [vmem:[#allocation5 + $0x508] ss:$16 sps:$4 sm:$0xff]  }
  0xf4   :  { %1829 = vmatprep.subr.bf16.mxu1 %v4413_v56  ;;  %v4458_v56 = vld [vmem:[#allocation5 + $0x52c] ss:$16 sps:$4 sm:$0xff]  }
  0xf5   :  { %2785 = vmatpush1.bf16.msra.mxu0 %v4507_v1  ;;  %v4470_v1 = vld [vmem:[#allocation5 + $0x5ac] ss:$16 sps:$4 sm:$0xff]  }
  0xf6   :  { %2786 = vmatprep.subr.bf16.mxu0 %v4515_v2  ;;  %v4468_v2 = vld [vmem:[#allocation5 + $0x5a8] ss:$16 sps:$4 sm:$0xff]  }
  0xf7   :  { %1746 = vmatmul.mubr.bf16.gmra.mrb[4].mxu0 %v5062_v57  ;;  %1830 = vmatpush1.bf16.msra.mxu1 %v4411_v58  ;;  %v4456_v58 = vld [vmem:[#allocation5 + $0x528] ss:$16 sps:$4 sm:$0xff]  }
  0xf8   :  { %1831 = vmatprep.subr.bf16.mxu1 %v4416_v59  ;;  %v4461_v59 = vld [vmem:[#allocation5 + $0x54c] ss:$16 sps:$4 sm:$0xff]  }
  0xf9   :  { %2787 = vmatpush1.bf16.msra.mxu0 %v4513_v7  ;;  %v4471_v7 = vld [vmem:[#allocation5 + $0x5c8] ss:$16 sps:$4 sm:$0xff]  }
  0xfa   :  { %2788 = vmatprep.subr.bf16.mxu0 %v4521_v8  ;;  %v4585_v8 = vld [vmem:[#allocation7 + $0x1c0] ss:$16 sps:$4 sm:$0xff]  }
  0xfb   :  { %1832 = vmatpush1.bf16.msra.mxu1 %v4414_v62  ;;  %v4462_v62 = vld [vmem:[#allocation5 + $0x568] ss:$16 sps:$4 sm:$0xff]  }
  0xfc   :  { %1833 = vmatprep.subr.bf16.mxu1 %v4419_v0  ;;  %v4465_v0 = vld [vmem:[#allocation5 + $0x588] ss:$16 sps:$4 sm:$0xff]  }
  0xfd   :  { %2789 = vmatpush1.bf16.msra.mxu0 %v4519_v11  ;;  %v4474_v11 = vld [vmem:[#allocation5 + $0x5e8] ss:$16 sps:$4 sm:$0xff]  }
  0xfe   :  { %2790 = vmatprep.subr.bf16.mxu0 %v4527_v12  ;;  %v4591_v12 = vld [vmem:[#allocation7 + $0x1e0] ss:$16 sps:$4 sm:$0xff]  }
  0xff   :  { %1834 = vmatpush1.bf16.msra.mxu1 %v4417_v3  ;;  %v4473_v3 = vld [vmem:[#allocation5 + $0x5cc] ss:$16 sps:$4 sm:$0xff]  }
 0x100   :  { %1835 = vmatprep.subr.bf16.mxu1 %v4422_v4  ;;  %v4587_v4 = vld [vmem:[#allocation7 + $0x1c4] ss:$16 sps:$4 sm:$0xff]  }
 0x101   :  { %2791 = vmatpush1.bf16.msra.mxu0 %v4525_v16  ;;  %v4482_v16 = vld [vmem:[#allocation5 + $0x62c] ss:$16 sps:$4 sm:$0xff]  }
 0x102   :  { %2792 = vmatprep.subr.bf16.mxu0 %v4533_v17  ;;  %v4480_v17 = vld [vmem:[#allocation5 + $0x628] ss:$16 sps:$4 sm:$0xff]  }
 0x103   :  { %1836 = vmatpush1.bf16.msra.mxu1 %v4420_v9  ;;  %v4476_v9 = vld [vmem:[#allocation5 + $0x5ec] ss:$16 sps:$4 sm:$0xff]  }
 0x104   :  { %1837 = vmatprep.subr.bf16.mxu1 %v4425_v10  ;;  %v4593_v10 = vld [vmem:[#allocation7 + $0x1e4] ss:$16 sps:$4 sm:$0xff]  }
 0x105   :  { %2793 = vmatpush1.bf16.msra.mxu0 %v4531_v21  ;;  %v4488_v21 = vld [vmem:[#allocation5 + $0x66c] ss:$16 sps:$4 sm:$0xff]  }
 0x106   :  { %2794 = vmatprep.subr.bf16.mxu0 %v4539_v22  ;;  %v4599_v22 = vld [vmem:[#allocation7 + $0x204] ss:$16 sps:$4 sm:$0xff]  }
 0x107   :  { %1838 = vmatpush1.bf16.msra.mxu1 %v4423_v13  ;;  %v4479_v13 = vld [vmem:[#allocation5 + $0x60c] ss:$16 sps:$4 sm:$0xff]  }
 0x108   :  { %1839 = vmatprep.subr.bf16.mxu1 %v4428_v14  ;;  %v4477_v14 = vld [vmem:[#allocation5 + $0x608] ss:$16 sps:$4 sm:$0xff]  }
 0x109   :  { %2795 = vmatpush1.bf16.msra.mxu0 %v4537_v26  ;;  %v4492_v26 = vld [vmem:[#allocation5 + $0x6a8] ss:$16 sps:$4 sm:$0xff]  }
 0x10a   :  { %2796 = vmatprep.subr.bf16.mxu0 %v4545_v27  ;;  %v4497_v27 = vld [vmem:[#allocation5 + $0x6cc] ss:$16 sps:$4 sm:$0xff]  }
 0x10b   :  { %1840 = vmatpush1.bf16.msra.mxu1 %v4426_v18  ;;  %v4485_v18 = vld [vmem:[#allocation5 + $0x64c] ss:$16 sps:$4 sm:$0xff]  }
 0x10c   :  { %1862 = vmatprep.subr.bf16.mxu1 %v4431_v19  ;;  %v4483_v19 = vld [vmem:[#allocation5 + $0x648] ss:$16 sps:$4 sm:$0xff]  }
 0x10d   :  { %2797 = vmatpush1.bf16.msra.mxu0 %v4543_v29  ;;  %v4495_v29 = vld [vmem:[#allocation5 + $0x6c8] ss:$16 sps:$4 sm:$0xff]  }
 0x10e   :  { %1842 = vmatmul.mubr.bf16.vlgmr.msra.gmra.mrb[8].mxu1 %v5024_v6  ;;  %2798 = vmatprep.subr.bf16.mxu0 %v4551_v33  ;;  %v4438_v6 = vld [vmem:[#allocation5 + $0x468] ss:$16 sps:$4 sm:$0xff]  }
 0x10f   :  { %1863 = vmatpush1.bf16.msra.mxu1 %v4429_v23  ;;  %1851 = vmatprep.mubr.bf16.mxu1 %v5032_v32  ;;  %v4555_v32 = vld [vmem:[#allocation7 + $0x120] ss:$16 sps:$4 sm:$0xff]   ;;  %v4486_v23 = vld [vmem:[#allocation5 + $0x668] ss:$16 sps:$4 sm:$0xff]  }
 0x110   :  { %1864 = vmatprep.subr.bf16.mxu1 %v4434_v24  ;;  %v4489_v24 = vld [vmem:[#allocation5 + $0x688] ss:$16 sps:$4 sm:$0xff]  }
 0x111   :  { %2799 = vmatpush1.bf16.msra.mxu0 %v4549_v37  ;;  %v4506_v37 = vld [vmem:[#allocation7 + $0xc] ss:$16 sps:$4 sm:$0xff]  }
 0x112   :  { %2800 = vmatprep.subr.bf16.mxu0 %v4557_v38  ;;  %v4504_v38 = vld [vmem:[#allocation7 + $0x8] ss:$16 sps:$4 sm:$0xff]  }
 0x113   :  { %1865 = vmatpush1.bf16.msra.mxu1 %v4432_v5 }
 0x114   :  { %1866 = vmatprep.subr.bf16.mxu1 %v4437_v28 }
 0x115   :  { %2801 = vmatpush1.bf16.msra.mxu0 %v4555_v32  ;;  %v4518_v32 = vld [vmem:[#allocation7 + $0x4c] ss:$16 sps:$4 sm:$0xff]  }
 0x116   :  { %1852 = vmatmul.mubr.bf16.gmra.mrb[12].mxu1 %v5037_v36  ;;  %2802 = vmatprep.subr.bf16.mxu0 %v4563_v39  ;;  %v4444_v36 = vld [vmem:[#allocation5 + $0x4a8] ss:$16 sps:$4 sm:$0xff]  }
 0x117   :  { %1867 = vmatpush1.bf16.msra.mxu1 %v4435_v30  ;;  %1894 = vmatprep.mubr.bf16.mxu1 %v5041_v41  ;;  %v4447_v41 = vld [vmem:[#allocation5 + $0x4c8] ss:$16 sps:$4 sm:$0xff]   ;;  %v4500_v30 = vld [vmem:[#allocation5 + $0x6ec] ss:$16 sps:$4 sm:$0xff]  }
 0x118   :  { %1868 = vmatprep.subr.bf16.mxu1 %v4440_v34  ;;  %v4498_v34 = vld [vmem:[#allocation5 + $0x6e8] ss:$16 sps:$4 sm:$0xff]  }
 0x119   :  { %2803 = vmatpush1.bf16.msra.mxu0 %v4561_v43  ;;  %v4516_v39 = vld [vmem:[#allocation7 + $0x48] ss:$16 sps:$4 sm:$0xff]  }
 0x11a   :  { %2804 = vmatprep.subr.bf16.mxu0 %v4569_v44  ;;  %v4522_v44 = vld [vmem:[#allocation7 + $0x68] ss:$16 sps:$4 sm:$0xff]  }
 0x11b   :  { %1869 = vmatpush1.bf16.msra.mxu1 %v4438_v6  ;;  %v4512_v6 = vld [vmem:[#allocation7 + $0x2c] ss:$16 sps:$4 sm:$0xff]  }
 0x11c   :  { %1870 = vmatprep.subr.bf16.mxu1 %v4443_v31  ;;  %v4510_v31 = vld [vmem:[#allocation7 + $0x28] ss:$16 sps:$4 sm:$0xff]  }
 0x11d   :  { %2805 = vmatpush1.bf16.msra.mxu0 %v4567_v52  ;;  %v4536_v52 = vld [vmem:[#allocation7 + $0xac] ss:$16 sps:$4 sm:$0xff]  }
 0x11e   :  { %2806 = vmatprep.subr.bf16.mxu0 %v4575_v46  ;;  %v4534_v46 = vld [vmem:[#allocation7 + $0xa8] ss:$16 sps:$4 sm:$0xff]  }
 0x11f   :  { %1871 = vmatpush1.bf16.msra.mxu1 %v4441_v40  ;;  %v4524_v40 = vld [vmem:[#allocation7 + $0x6c] ss:$16 sps:$4 sm:$0xff]  }
 0x120   :  { %1872 = vmatprep.subr.bf16.mxu1 %v4446_v42 }
 0x121   :  { %2807 = vmatpush1.bf16.msra.mxu0 %v4573_v48  ;;  %v4546_v48 = vld [vmem:[#allocation7 + $0xe8] ss:$16 sps:$4 sm:$0xff]  }
 0x122   :  { %2808 = vmatprep.subr.bf16.mxu0 %v4581_v49  ;;  %v4554_v49 = vld [vmem:[#allocation7 + $0x10c] ss:$16 sps:$4 sm:$0xff]  }
 0x123   :  { %1873 = vmatpush1.bf16.msra.mxu1 %v4444_v36 }
 0x124   :  { %1874 = vmatprep.subr.bf16.mxu1 %v4449_v45  ;;  %v4528_v45 = vld [vmem:[#allocation7 + $0x88] ss:$16 sps:$4 sm:$0xff]  }
 0x125   :  { %2809 = vmatpush1.bf16.msra.mxu0 %v4579_v54  ;;  %v4558_v54 = vld [vmem:[#allocation7 + $0x128] ss:$16 sps:$4 sm:$0xff]  }
 0x126   :  { %2810 = vmatprep.subr.bf16.mxu0 %v4587_v4  ;;  %v4602_v4 = vld [vmem:[#allocation7 + $0x20c] ss:$16 sps:$4 sm:$0xff]  }
 0x127   :  { %1875 = vmatpush1.bf16.msra.mxu1 %v4447_v41  ;;  %v4542_v41 = vld [vmem:[#allocation7 + $0xcc] ss:$16 sps:$4 sm:$0xff]  }
 0x128   :  { %1876 = vmatprep.subr.bf16.mxu1 %v4452_v47  ;;  %v4548_v47 = vld [vmem:[#allocation7 + $0xec] ss:$16 sps:$4 sm:$0xff]  }
 0x129   :  { %2811 = vmatpush1.bf16.msra.mxu0 %v4585_v8 }
 0x12a   :  { %2812 = vmatprep.subr.bf16.mxu0 %v4593_v10  ;;  %v5100_v10 = vld [vmem:[%s5158_s2] sm:$0xf] }
 0x12b   :  { %1877 = vmatpush1.bf16.msra.mxu1 %v4450_v50  ;;  %v4552_v50 = vld [vmem:[#allocation7 + $0x108] ss:$16 sps:$4 sm:$0xff]  }
 0x12c   :  { %1878 = vmatprep.subr.bf16.mxu1 %v4455_v53  ;;  %v4560_v53 = vld [vmem:[#allocation7 + $0x12c] ss:$16 sps:$4 sm:$0xff]  }
 0x12d   :  { %2813 = vmatpush1.bf16.msra.mxu0 %v4591_v12 }
 0x12e   :  { %2835 = vmatprep.subr.bf16.mxu0 %v4599_v22 }
 0x12f   :  { %1879 = vmatpush1.bf16.msra.mxu1 %v4453_v55  ;;  %v4566_v55 = vld [vmem:[#allocation7 + $0x14c] ss:$16 sps:$4 sm:$0xff]  }
 0x130   :  { %1880 = vmatprep.subr.bf16.mxu1 %v4458_v56  ;;  %v4564_v56 = vld [vmem:[#allocation7 + $0x148] ss:$16 sps:$4 sm:$0xff]  }
 0x133   :  { %1881 = vmatpush1.bf16.msra.mxu1 %v4456_v58  ;;  %v4572_v58 = vld [vmem:[#allocation7 + $0x16c] ss:$16 sps:$4 sm:$0xff]  }
 0x134   :  { %1882 = vmatprep.subr.bf16.mxu1 %v4461_v59  ;;  %v4570_v59 = vld [vmem:[#allocation7 + $0x168] ss:$16 sps:$4 sm:$0xff]  }
 0x137   :  { %1883 = vmatpush1.bf16.msra.mxu1 %v4459_v60  ;;  %v4578_v60 = vld [vmem:[#allocation7 + $0x18c] ss:$16 sps:$4 sm:$0xff]  }
 0x138   :  { %1884 = vmatprep.subr.bf16.mxu1 %v4464_v61  ;;  %v4576_v61 = vld [vmem:[#allocation7 + $0x188] ss:$16 sps:$4 sm:$0xff]  }
 0x13b   :  { %1885 = vmatpush1.bf16.msra.mxu1 %v4462_v62  ;;  %v4584_v62 = vld [vmem:[#allocation7 + $0x1ac] ss:$16 sps:$4 sm:$0xff]  }
 0x13c   :  { %1886 = vmatprep.subr.bf16.mxu1 %v4467_v63  ;;  %v4582_v63 = vld [vmem:[#allocation7 + $0x1a8] ss:$16 sps:$4 sm:$0xff]  }
 0x13f   :  { %1887 = vmatpush1.bf16.msra.mxu1 %v4465_v0  ;;  %v4590_v0 = vld [vmem:[#allocation7 + $0x1cc] ss:$16 sps:$4 sm:$0xff]  }
 0x140   :  { %1888 = vmatprep.subr.bf16.mxu1 %v4470_v1  ;;  %v4588_v1 = vld [vmem:[#allocation7 + $0x1c8] ss:$16 sps:$4 sm:$0xff]  }
 0x143   :  { %1889 = vmatpush1.bf16.msra.mxu1 %v4468_v2  ;;  %v4596_v2 = vld [vmem:[#allocation7 + $0x1ec] ss:$16 sps:$4 sm:$0xff]  }
 0x144   :  { %1890 = vmatprep.subr.bf16.mxu1 %v4473_v3  ;;  %v4594_v3 = vld [vmem:[#allocation7 + $0x1e8] ss:$16 sps:$4 sm:$0xff]  }
 0x147   :  { %1891 = vmatpush1.bf16.msra.mxu1 %v4471_v7  ;;  %v332_v7 = vlaneseq }
 0x148   :  { %1892 = vmatprep.subr.bf16.mxu1 %v4476_v9 }
 0x149   :  { %v5092_v8 = vshrl.u32 %v332_v7, 7  ;;  %v4630_v7 = vld [vmem:[#allocation7 + $0x2a8] ss:$16 sps:$4 sm:$0xff]  }
 0x14b   :  { %1893 = vmatpush1.bf16.msra.mxu1 %v4474_v11  ;;  %v5095_v9 = vsub.s32 0, %v5092_v8  ;;  %v5103_v11 = vsub.s32 1, %v5092_v8 }
 0x14c   :  { %1915 = vmatprep.subr.bf16.mxu1 %v4479_v13 }
 0x14d   :  { %v335_v12 = vrot.slane %v5100_v10, %v5095_v9  ;;  %v339_v13 = vrot.slane %v5100_v10, %v5103_v11 }
 0x14e   :  { %1895 = vmatmul.mubr.bf16.vlgmr.msra.gmra.mrb[8].mxu1 %v5044_v15  ;;  %v4491_v15 = vld [vmem:[#allocation5 + $0x68c] ss:$16 sps:$4 sm:$0xff]  }
 0x14f   :  { %1916 = vmatpush1.bf16.msra.mxu1 %v4477_v14  ;;  %1904 = vmatprep.mubr.bf16.mxu1 %v5046_v20  ;;  %v4494_v20 = vld [vmem:[#allocation5 + $0x6ac] ss:$16 sps:$4 sm:$0xff]  }
 0x150   :  { %1917 = vmatprep.subr.bf16.mxu1 %v4482_v16 }
 0x153   :  { %1918 = vmatpush1.bf16.msra.mxu1 %v4480_v17 }
 0x154   :  { %1919 = vmatprep.subr.bf16.mxu1 %v4485_v18 }
 0x156   :  { %1905 = vmatmul.mubr.bf16.gmra.mrb[12].mxu1 %v5052_v25 }
 0x157   :  { %1920 = vmatpush1.bf16.msra.mxu1 %v4483_v19  ;;  %1947 = vmatprep.mubr.bf16.mxu1 %v4901_v35 }
 0x158   :  { %1921 = vmatprep.subr.bf16.mxu1 %v4488_v21 }
 0x15b   :  { %1922 = vmatpush1.bf16.msra.mxu1 %v4486_v23 }
 0x15c   :  { %1923 = vmatprep.subr.bf16.mxu1 %v4491_v15 }
 0x15f   :  { %1924 = vmatpush1.bf16.msra.mxu1 %v4489_v24 }
 0x160   :  { %1925 = vmatprep.subr.bf16.mxu1 %v4494_v20 }
 0x161   :  { %v5073_v5 = vpop.f32.mrb[0].mxu1 }
 0x162   :  { %v5075_v28 = vpop.f32.mrb[1].mxu1  ;;  %v1579_v14 = vadd.f32 %v5073_v5, %v335_v12 }
 0x163   :  { %v5077_v25 = vpop.f32.mrb[2].mxu1  ;;  %1926 = vmatpush1.bf16.msra.mxu1 %v4492_v26  ;;  %v1581_v16 = vadd.f32 %v5075_v28, %v339_v13 }
 0x164   :  { %v5079_v33 = vpop.f32.mrb[3].mxu1  ;;  %1927 = vmatprep.subr.bf16.mxu1 %v4497_v27  ;;  %v1583_v18 = vadd.f32 %v5077_v25, %v335_v12 }
 0x165   :  { %v1585_v22 = vadd.f32 %v5079_v33, %v339_v13 }
 0x167   :  { %1928 = vmatpush1.bf16.msra.mxu1 %v4495_v29 }
 0x168   :  { %1929 = vmatprep.subr.bf16.mxu1 %v4500_v30 }
 0x169   :  { %v5083_v42 = vpop.f32.mrb[4].mxu1 }
 0x16a   :  { %v5086_v43 = vpop.f32.mrb[5].mxu1  ;;  %v1589_v5 = vadd.f32 %v5083_v42, %v335_v12 }
 0x16b   :  { %1930 = vmatpush1.bf16.msra.mxu1 %v4498_v34  ;;  %v5088_v36 = vpop.f32.mrb[6].mxu1  ;;  %v1591_v28 = vadd.f32 %v5086_v43, %v339_v13 }
 0x16c   :  { %2888 = vmatprep.subr.bf16.mxu1 %v4506_v37  ;;  %v1593_v33 = vadd.f32 %v5088_v36, %v335_v12  ;;  %v4635_v12 = vld [vmem:[#allocation7 + $0x2c4] ss:$16 sps:$4 sm:$0xff]  }
 0x16e   :  { %1948 = vmatmul.mubr.bf16.vlgmr.msra.gmra.mrb[8].mxu1 %v5058_v51  ;;  %v4530_v51 = vld [vmem:[#allocation7 + $0x8c] ss:$16 sps:$4 sm:$0xff]  }
 0x16f   :  { %1957 = vmatprep.mubr.bf16.mxu1 %v4901_v35  ;;  %2889 = vmatpush1.bf16.msra.mxu1 %v4504_v38  ;;  %v5090_v35 = vpop.f32.mrb[7].mxu1 }
 0x170   :  { %2890 = vmatprep.subr.bf16.mxu1 %v4512_v6  ;;  %v4597_v6 = vld [vmem:[#allocation7 + $0x200] ss:$16 sps:$4 sm:$0xff]  }
 0x173   :  { %2891 = vmatpush1.bf16.msra.mxu1 %v4510_v31  ;;  %v4600_v31 = vld [vmem:[#allocation7 + $0x208] ss:$16 sps:$4 sm:$0xff]  }
 0x174   :  { %2892 = vmatprep.subr.bf16.mxu1 %v4518_v32 }
 0x176   :  { %1958 = vmatmul.mubr.bf16.gmra.mrb[12].mxu1 %v5062_v57  ;;  %v4540_v57 = vld [vmem:[#allocation7 + $0xc8] ss:$16 sps:$4 sm:$0xff]  }
 0x177   :  { %2893 = vmatpush1.bf16.msra.mxu1 %v4516_v39 }
 0x178   :  { %2894 = vmatprep.subr.bf16.mxu1 %v4524_v40  ;;  %v4605_v40 = vld [vmem:[#allocation7 + $0x224] ss:$16 sps:$4 sm:$0xff]  }
 0x17b   :  { %2895 = vmatpush1.bf16.msra.mxu1 %v4522_v44  ;;  %v4608_v44 = vld [vmem:[#allocation7 + $0x22c] ss:$16 sps:$4 sm:$0xff]  }
 0x17c   :  { %2896 = vmatprep.subr.bf16.mxu1 %v4530_v51  ;;  %v1595_v51 = vadd.f32 %v5090_v35, %v339_v13  ;;  %v4638_v13 = vld [vmem:[#allocation7 + $0x2cc] ss:$16 sps:$4 sm:$0xff]  }
 0x17f   :  { %2897 = vmatpush1.bf16.msra.mxu1 %v4528_v45 }
 0x180   :  { %2898 = vmatprep.subr.bf16.mxu1 %v4536_v52 }
 0x183   :  { %2899 = vmatpush1.bf16.msra.mxu1 %v4534_v46 }
 0x184   :  { %2900 = vmatprep.subr.bf16.mxu1 %v4542_v41  ;;  %v4603_v41 = vld [vmem:[#allocation7 + $0x220] ss:$16 sps:$4 sm:$0xff]  }
 0x187   :  { %2901 = vmatpush1.bf16.msra.mxu1 %v4540_v57  ;;  %v4606_v57 = vld [vmem:[#allocation7 + $0x228] ss:$16 sps:$4 sm:$0xff]  }
 0x188   :  { %2902 = vmatprep.subr.bf16.mxu1 %v4548_v47 }
 0x18b   :  { %2903 = vmatpush1.bf16.msra.mxu1 %v4546_v48  ;;  %v4611_v48 = vld [vmem:[#allocation7 + $0x244] ss:$16 sps:$4 sm:$0xff]  }
 0x18c   :  { %2904 = vmatprep.subr.bf16.mxu1 %v4554_v49  ;;  %v4614_v49 = vld [vmem:[#allocation7 + $0x24c] ss:$16 sps:$4 sm:$0xff]  }
 0x18f   :  { %2905 = vmatpush1.bf16.msra.mxu1 %v4552_v50 }
 0x190   :  { %2906 = vmatprep.subr.bf16.mxu1 %v4560_v53 }
 0x193   :  { %2907 = vmatpush1.bf16.msra.mxu1 %v4558_v54 }
 0x194   :  { %2908 = vmatprep.subr.bf16.mxu1 %v4566_v55  ;;  %v4609_v55 = vld [vmem:[#allocation7 + $0x240] ss:$16 sps:$4 sm:$0xff]  }
 0x197   :  { %2909 = vmatpush1.bf16.msra.mxu1 %v4564_v56  ;;  %v4612_v56 = vld [vmem:[#allocation7 + $0x248] ss:$16 sps:$4 sm:$0xff]  }
 0x198   :  { %2910 = vmatprep.subr.bf16.mxu1 %v4572_v58  ;;  %v4617_v58 = vld [vmem:[#allocation7 + $0x264] ss:$16 sps:$4 sm:$0xff]  }
 0x19b   :  { %2911 = vmatpush1.bf16.msra.mxu1 %v4570_v59  ;;  %v4620_v59 = vld [vmem:[#allocation7 + $0x26c] ss:$16 sps:$4 sm:$0xff]  }
 0x19c   :  { %2912 = vmatprep.subr.bf16.mxu1 %v4578_v60  ;;  %v4615_v60 = vld [vmem:[#allocation7 + $0x260] ss:$16 sps:$4 sm:$0xff]  }
 0x19f   :  { %2913 = vmatpush1.bf16.msra.mxu1 %v4576_v61  ;;  %v4618_v61 = vld [vmem:[#allocation7 + $0x268] ss:$16 sps:$4 sm:$0xff]  }
 0x1a0   :  { %2914 = vmatprep.subr.bf16.mxu1 %v4584_v62  ;;  %v4623_v62 = vld [vmem:[#allocation7 + $0x284] ss:$16 sps:$4 sm:$0xff]  }
 0x1a3   :  { %2915 = vmatpush1.bf16.msra.mxu1 %v4582_v63  ;;  %v4626_v63 = vld [vmem:[#allocation7 + $0x28c] ss:$16 sps:$4 sm:$0xff]  }
 0x1a4   :  { %2916 = vmatprep.subr.bf16.mxu1 %v4590_v0  ;;  %v4621_v0 = vld [vmem:[#allocation7 + $0x280] ss:$16 sps:$4 sm:$0xff]  }
 0x1a7   :  { %2917 = vmatpush1.bf16.msra.mxu1 %v4588_v1  ;;  %v4624_v1 = vld [vmem:[#allocation7 + $0x288] ss:$16 sps:$4 sm:$0xff]  }
 0x1a8   :  { %2918 = vmatprep.subr.bf16.mxu1 %v4596_v2  ;;  %v4629_v2 = vld [vmem:[#allocation7 + $0x2a4] ss:$16 sps:$4 sm:$0xff]  }
 0x1ab   :  { %2919 = vmatpush1.bf16.msra.mxu1 %v4594_v3  ;;  %v4632_v3 = vld [vmem:[#allocation7 + $0x2ac] ss:$16 sps:$4 sm:$0xff]  }
 0x1ac   :  { %2941 = vmatprep.subr.bf16.mxu1 %v4602_v4  ;;  %v4627_v4 = vld [vmem:[#allocation7 + $0x2a0] ss:$16 sps:$4 sm:$0xff]  }
 0x1c2   :  { %v1737_v17 = vpop.f32.mrb[0].mxu0 }
 0x1c3   :  { %v4023_v19 = vadd.f32 %v1737_v17, %v1579_v14  ;;  %v1739_v21 = vpop.f32.mrb[1].mxu0  ;;  %v4633_v14 = vld [vmem:[#allocation7 + $0x2c0] ss:$16 sps:$4 sm:$0xff]   ;;  %v4641_v17 = vld [vmem:[#allocation7 + $0x2e4] ss:$16 sps:$4 sm:$0xff]  }
 0x1c4   :  { %v4025_v23 = vadd.f32 %v1739_v21, %v1581_v16  ;;  %v1741_v15 = vpop.f32.mrb[2].mxu0  ;;  %v4636_v16 = vld [vmem:[#allocation7 + $0x2c8] ss:$16 sps:$4 sm:$0xff]  }
 0x1c5   :  { %v4027_v24 = vadd.f32 %v1741_v15, %v1583_v18  ;;  %v1743_v20 = vpop.f32.mrb[3].mxu0  ;;  %v1968_v27 = vmax.f32 %v4023_v19, 0.0  ;;  %v4644_v18 = vld [vmem:[#allocation7 + $0x2ec] ss:$16 sps:$4 sm:$0xff]   ;;  %v4639_v19 = vld [vmem:[#allocation7 + $0x2e0] ss:$16 sps:$4 sm:$0xff]  }
 0x1c6   :  { %v4029_v26 = vadd.f32 %v1743_v20, %v1585_v22  ;;  %v1969_v30 = vmax.f32 %v4025_v23, 0.0  ;;  %v4642_v21 = vld [vmem:[#allocation7 + $0x2e8] ss:$16 sps:$4 sm:$0xff]   ;;  %v4647_v22 = vld [vmem:[#allocation7 + $0x304] ss:$16 sps:$4 sm:$0xff]  }
 0x1c7   :  { %v1972_v29 = vmax.f32 %v4027_v24, 0.0  ;;  %v4650_v23 = vld [vmem:[#allocation7 + $0x30c] ss:$16 sps:$4 sm:$0xff]   ;;  %v4645_v15 = vld [vmem:[#allocation7 + $0x300] ss:$16 sps:$4 sm:$0xff]  }
 0x1c8   :  { %v1973_v34 = vmax.f32 %v4029_v26, 0.0  ;;  %v4648_v24 = vld [vmem:[#allocation7 + $0x308] ss:$16 sps:$4 sm:$0xff]   ;;  %v4653_v20 = vld [vmem:[#allocation7 + $0x324] ss:$16 sps:$4 sm:$0xff]  }
 0x1c9   :  { %v1984_v37 = vpack.c.bf16 %v1972_v29, %v1968_v27  ;;  %v4656_v26 = vld [vmem:[#allocation7 + $0x32c] ss:$16 sps:$4 sm:$0xff]   ;;  %v4651_v27 = vld [vmem:[#allocation7 + $0x320] ss:$16 sps:$4 sm:$0xff]   ;;  %v4654_v29 = vld [vmem:[#allocation7 + $0x328] ss:$16 sps:$4 sm:$0xff]  }
 0x1ca   :  { %v1985_v38 = vpack.c.bf16 %v1973_v34, %v1969_v30  ;;  %v1747_v25 = vpop.f32.mrb[4].mxu0  ;;  %v4659_v30 = vld [vmem:[#allocation7 + $0x344] ss:$16 sps:$4 sm:$0xff]   ;;  %v4662_v34 = vld [vmem:[#allocation7 + $0x34c] ss:$16 sps:$4 sm:$0xff]  }
 0x1cb   :  { %v4031_v32 = vadd.f32 %v1747_v25, %v1589_v5  ;;  %v1749_v39 = vpop.f32.mrb[5].mxu0  ;;  %v4657_v5 = vld [vmem:[#allocation7 + $0x340] ss:$16 sps:$4 sm:$0xff]  }
 0x1cc   :  { %v4033_v45 = vadd.f32 %v1749_v39, %v1591_v28  ;;  %v1751_v52 = vpop.f32.mrb[6].mxu0  ;;  %2814 = vmatprep.mubr.bf16.mxu0 %v1985_v38  ;;  %2920 = vmatprep.mubr.bf16.mxu1 %v1985_v38  ;;  %v4665_v28 = vld [vmem:[#allocation7 + $0x364] ss:$16 sps:$4 sm:$0xff]   ;;  %v4668_v38 = vld [vmem:[#allocation7 + $0x36c] ss:$16 sps:$4 sm:$0xff]  }
 0x1cd   :  { %v4035_v42 = vadd.f32 %v1751_v52, %v1593_v33  ;;  %v1753_v46 = vpop.f32.mrb[7].mxu0  ;;  %2815 = vmatmul.mubr.bf16.vlgmr.msra.gmra.mrb[8].mxu0 %v1984_v37  ;;  %2921 = vmatmul.mubr.bf16.vlgmr.msra.gmra.mrb[16].mxu1 %v1984_v37  ;;  %v1976_v36 = vmax.f32 %v4031_v32, 0.0  ;;  %v4660_v37 = vld [vmem:[#allocation7 + $0x348] ss:$16 sps:$4 sm:$0xff]   ;;  %v4663_v25 = vld [vmem:[#allocation7 + $0x360] ss:$16 sps:$4 sm:$0xff]  }
 0x1ce   :  { %v4037_v43 = vadd.f32 %v1753_v46, %v1595_v51  ;;  %2836 = vmatpush1.bf16.msra.mxu0 %v4597_v6  ;;  %2942 = vmatpush1.bf16.msra.mxu1 %v4600_v31  ;;  %v1977_v35 = vmax.f32 %v4033_v45, 0.0  ;;  %v4666_v6 = vld [vmem:[#allocation7 + $0x368] ss:$16 sps:$4 sm:$0xff]   ;;  %v4671_v31 = vld [vmem:[#allocation7 + $0x384] ss:$16 sps:$4 sm:$0xff]  }
 0x1cf   :  { %v1980_v47 = vmax.f32 %v4035_v42, 0.0  ;;  %2837 = vmatprep.subr.bf16.mxu0 %v4605_v40  ;;  %2943 = vmatprep.subr.bf16.mxu1 %v4608_v44  ;;  %v4674_v33 = vld [vmem:[#allocation7 + $0x38c] ss:$16 sps:$4 sm:$0xff]   ;;  %v4669_v32 = vld [vmem:[#allocation7 + $0x380] ss:$16 sps:$4 sm:$0xff]  }
 0x1d0   :  { %v1981_v50 = vmax.f32 %v4037_v43, 0.0  ;;  %v4672_v39 = vld [vmem:[#allocation7 + $0x388] ss:$16 sps:$4 sm:$0xff]   ;;  %v4677_v40 = vld [vmem:[#allocation7 + $0x3a4] ss:$16 sps:$4 sm:$0xff]  }
 0x1d1   :  { %v1988_v53 = vpack.c.bf16 %v1980_v47, %v1976_v36  ;;  %v4680_v44 = vld [vmem:[#allocation7 + $0x3ac] ss:$16 sps:$4 sm:$0xff]   ;;  %v4675_v51 = vld [vmem:[#allocation7 + $0x3a0] ss:$16 sps:$4 sm:$0xff]   ;;  %v4678_v45 = vld [vmem:[#allocation7 + $0x3a8] ss:$16 sps:$4 sm:$0xff]  }
 0x1d2   :  { %v1989_v54 = vpack.c.bf16 %v1981_v50, %v1977_v35  ;;  %2838 = vmatpush1.bf16.msra.mxu0 %v4603_v41  ;;  %2944 = vmatpush1.bf16.msra.mxu1 %v4606_v57  ;;  %v4683_v52 = vld [vmem:[#allocation7 + $0x3c4] ss:$16 sps:$4 sm:$0xff]   ;;  %v4686_v42 = vld [vmem:[#allocation7 + $0x3cc] ss:$16 sps:$4 sm:$0xff]   ;;  %v4681_v46 = vld [vmem:[#allocation7 + $0x3c0] ss:$16 sps:$4 sm:$0xff]  }
 0x1d3   :  { %2839 = vmatprep.subr.bf16.mxu0 %v4611_v48  ;;  %2945 = vmatprep.subr.bf16.mxu1 %v4614_v49  ;;  %v4684_v43 = vld [vmem:[#allocation7 + $0x3c8] ss:$16 sps:$4 sm:$0xff]   ;;  %v4689_v41 = vld [vmem:[#allocation7 + $0x3e4] ss:$16 sps:$4 sm:$0xff]   ;;  %v4692_v57 = vld [vmem:[#allocation7 + $0x3ec] ss:$16 sps:$4 sm:$0xff]  }
 0x1d4   :  { %2824 = vmatprep.mubr.bf16.mxu0 %v1989_v54  ;;  %2930 = vmatprep.mubr.bf16.mxu1 %v1989_v54  ;;  %v4687_v36 = vld [vmem:[#allocation7 + $0x3e0] ss:$16 sps:$4 sm:$0xff]   ;;  %v4690_v47 = vld [vmem:[#allocation7 + $0x3e8] ss:$16 sps:$4 sm:$0xff]   ;;  %v4695_v48 = vld [vmem:[#allocation8 + $0x4] ss:$8 sps:$4 sm:$0xff]  }
 0x1d5   :  { %2825 = vmatmul.mubr.bf16.gmra.mrb[12].mxu0 %v1988_v53  ;;  %2931 = vmatmul.mubr.bf16.gmra.mrb[20].mxu1 %v1988_v53  ;;  %v342_v49 = vsub.s32 2, %v5092_v8  ;;  %v346_v35 = vsub.s32 3, %v5092_v8 }
 0x1d6   :  { %2840 = vmatpush1.bf16.msra.mxu0 %v4609_v55  ;;  %2946 = vmatpush1.bf16.msra.mxu1 %v4612_v56 }
 0x1d7   :  { %2841 = vmatprep.subr.bf16.mxu0 %v4617_v58  ;;  %2947 = vmatprep.subr.bf16.mxu1 %v4620_v59  ;;  %v343_v50 = vrot.slane %v5100_v10, %v342_v49  ;;  %v347_v53 = vrot.slane %v5100_v10, %v346_v35 }
 0x1da   :  { %2842 = vmatpush1.bf16.msra.mxu0 %v4615_v60  ;;  %2948 = vmatpush1.bf16.msra.mxu1 %v4618_v61 }
 0x1db   :  { %2843 = vmatprep.subr.bf16.mxu0 %v4623_v62  ;;  %2949 = vmatprep.subr.bf16.mxu1 %v4626_v63 }
 0x1de   :  { %2844 = vmatpush1.bf16.msra.mxu0 %v4621_v0  ;;  %2950 = vmatpush1.bf16.msra.mxu1 %v4624_v1 }
 0x1df   :  { %2845 = vmatprep.subr.bf16.mxu0 %v4629_v2  ;;  %2951 = vmatprep.subr.bf16.mxu1 %v4632_v3 }
 0x1e2   :  { %2846 = vmatpush1.bf16.msra.mxu0 %v4627_v4  ;;  %2952 = vmatpush1.bf16.msra.mxu1 %v4630_v7 }
 0x1e3   :  { %2847 = vmatprep.subr.bf16.mxu0 %v4635_v12  ;;  %2953 = vmatprep.subr.bf16.mxu1 %v4638_v13  ;;  %v4693_v12 = vld [vmem:[#allocation8] ss:$8 sps:$4 sm:$0xff]  }
 0x1e6   :  { %2848 = vmatpush1.bf16.msra.mxu0 %v4633_v14  ;;  %2954 = vmatpush1.bf16.msra.mxu1 %v4636_v16  ;;  %v4698_v16 = vld [vmem:[#allocation8 + $0x14] ss:$8 sps:$4 sm:$0xff]  }
 0x1e7   :  { %2849 = vmatprep.subr.bf16.mxu0 %v4641_v17  ;;  %2955 = vmatprep.subr.bf16.mxu1 %v4644_v18 }
 0x1ea   :  { %2850 = vmatpush1.bf16.msra.mxu0 %v4639_v19  ;;  %2956 = vmatpush1.bf16.msra.mxu1 %v4642_v21 }
 0x1eb   :  { %2851 = vmatprep.subr.bf16.mxu0 %v4647_v22  ;;  %2957 = vmatprep.subr.bf16.mxu1 %v4650_v23  ;;  %v4696_v22 = vld [vmem:[#allocation8 + $0x10] ss:$8 sps:$4 sm:$0xff]  }
 0x1ee   :  { %2852 = vmatpush1.bf16.msra.mxu0 %v4645_v15  ;;  %2958 = vmatpush1.bf16.msra.mxu1 %v4648_v24  ;;  %v4701_v24 = vld [vmem:[#allocation8 + $0x24] ss:$8 sps:$4 sm:$0xff]  }
 0x1ef   :  { %2853 = vmatprep.subr.bf16.mxu0 %v4653_v20  ;;  %2959 = vmatprep.subr.bf16.mxu1 %v4656_v26 }
 0x1f2   :  { %2854 = vmatpush1.bf16.msra.mxu0 %v4651_v27  ;;  %2960 = vmatpush1.bf16.msra.mxu1 %v4654_v29 }
 0x1f3   :  { %2855 = vmatprep.subr.bf16.mxu0 %v4659_v30  ;;  %2961 = vmatprep.subr.bf16.mxu1 %v4662_v34  ;;  %v4699_v30 = vld [vmem:[#allocation8 + $0x20] ss:$8 sps:$4 sm:$0xff]   ;;  %v4704_v34 = vld [vmem:[#allocation8 + $0x34] ss:$8 sps:$4 sm:$0xff]  }
 0x1f6   :  { %2856 = vmatpush1.bf16.msra.mxu0 %v4657_v5  ;;  %2962 = vmatpush1.bf16.msra.mxu1 %v4660_v37  ;;  %v4702_v5 = vld [vmem:[#allocation8 + $0x30] ss:$8 sps:$4 sm:$0xff]   ;;  %v4707_v37 = vld [vmem:[#allocation8 + $0x44] ss:$8 sps:$4 sm:$0xff]  }
 0x1f7   :  { %2857 = vmatprep.subr.bf16.mxu0 %v4665_v28  ;;  %2963 = vmatprep.subr.bf16.mxu1 %v4668_v38  ;;  %v4705_v28 = vld [vmem:[#allocation8 + $0x40] ss:$8 sps:$4 sm:$0xff]   ;;  %v4710_v38 = vld [vmem:[#allocation8 + $0x54] ss:$8 sps:$4 sm:$0xff]  }
 0x1fa   :  { %2858 = vmatpush1.bf16.msra.mxu0 %v4663_v25  ;;  %2964 = vmatpush1.bf16.msra.mxu1 %v4666_v6  ;;  %v4708_v25 = vld [vmem:[#allocation8 + $0x50] ss:$8 sps:$4 sm:$0xff]   ;;  %v4713_v6 = vld [vmem:[#allocation8 + $0x64] ss:$8 sps:$4 sm:$0xff]  }
 0x1fb   :  { %2859 = vmatprep.subr.bf16.mxu0 %v4671_v31  ;;  %2965 = vmatprep.subr.bf16.mxu1 %v4674_v33  ;;  %v4711_v31 = vld [vmem:[#allocation8 + $0x60] ss:$8 sps:$4 sm:$0xff]   ;;  %v4716_v33 = vld [vmem:[#allocation8 + $0x74] ss:$8 sps:$4 sm:$0xff]  }
 0x1fe   :  { %2860 = vmatpush1.bf16.msra.mxu0 %v4669_v32  ;;  %2966 = vmatpush1.bf16.msra.mxu1 %v4672_v39  ;;  %v4714_v32 = vld [vmem:[#allocation8 + $0x70] ss:$8 sps:$4 sm:$0xff]   ;;  %v4719_v39 = vld [vmem:[#allocation8 + $0x84] ss:$8 sps:$4 sm:$0xff]  }
 0x1ff   :  { %2861 = vmatprep.subr.bf16.mxu0 %v4677_v40  ;;  %2967 = vmatprep.subr.bf16.mxu1 %v4680_v44  ;;  %v4717_v40 = vld [vmem:[#allocation8 + $0x80] ss:$8 sps:$4 sm:$0xff]   ;;  %v4722_v44 = vld [vmem:[#allocation8 + $0x94] ss:$8 sps:$4 sm:$0xff]  }
 0x202   :  { %2862 = vmatpush1.bf16.msra.mxu0 %v4675_v51  ;;  %2968 = vmatpush1.bf16.msra.mxu1 %v4678_v45  ;;  %v4720_v51 = vld [vmem:[#allocation8 + $0x90] ss:$8 sps:$4 sm:$0xff]   ;;  %v4725_v45 = vld [vmem:[#allocation8 + $0xa4] ss:$8 sps:$4 sm:$0xff]  }
 0x203   :  { %2863 = vmatprep.subr.bf16.mxu0 %v4683_v52  ;;  %2969 = vmatprep.subr.bf16.mxu1 %v4686_v42  ;;  %v4723_v52 = vld [vmem:[#allocation8 + $0xa0] ss:$8 sps:$4 sm:$0xff]   ;;  %v4728_v42 = vld [vmem:[#allocation8 + $0xb4] ss:$8 sps:$4 sm:$0xff]  }
 0x206   :  { %2864 = vmatpush1.bf16.msra.mxu0 %v4681_v46  ;;  %2970 = vmatpush1.bf16.msra.mxu1 %v4684_v43  ;;  %v4726_v46 = vld [vmem:[#allocation8 + $0xb0] ss:$8 sps:$4 sm:$0xff]   ;;  %v4731_v43 = vld [vmem:[#allocation8 + $0xc4] ss:$8 sps:$4 sm:$0xff]  }
 0x207   :  { %2865 = vmatprep.subr.bf16.mxu0 %v4689_v41  ;;  %2971 = vmatprep.subr.bf16.mxu1 %v4692_v57  ;;  %v4729_v41 = vld [vmem:[#allocation8 + $0xc0] ss:$8 sps:$4 sm:$0xff]   ;;  %v4734_v57 = vld [vmem:[#allocation8 + $0xd4] ss:$8 sps:$4 sm:$0xff]  }
 0x20a   :  { %2866 = vmatpush1.bf16.msra.mxu0 %v4687_v36  ;;  %2972 = vmatpush1.bf16.msra.mxu1 %v4690_v47  ;;  %v4732_v36 = vld [vmem:[#allocation8 + $0xd0] ss:$8 sps:$4 sm:$0xff]   ;;  %v4737_v47 = vld [vmem:[#allocation8 + $0xe4] ss:$8 sps:$4 sm:$0xff]  }
 0x20b   :  { %3414 = vmatprep.subr.bf16.mxu0 %v4695_v48  ;;  %v4735_v48 = vld [vmem:[#allocation8 + $0xe0] ss:$8 sps:$4 sm:$0xff]  }
 0x241   :  { %v1949_v54 = vpop.f32.mrb[8].mxu1 }
 0x242   :  { %v4038_v55 = vadd.f32 %v1949_v54, %v343_v50  ;;  %v1951_v56 = vpop.f32.mrb[9].mxu1  ;;  %v4743_v54 = vld [vmem:[#allocation8 + $0x104] ss:$8 sps:$4 sm:$0xff]  }
 0x243   :  { %v4039_v58 = vadd.f32 %v1951_v56, %v347_v53  ;;  %v1953_v59 = vpop.f32.mrb[10].mxu1 }
 0x244   :  { %v4040_v60 = vadd.f32 %v1953_v59, %v343_v50  ;;  %v1955_v61 = vpop.f32.mrb[11].mxu1  ;;  %v1970_v63 = vmax.f32 %v4038_v55, 0.0  ;;  %v2120_v55 = vld [vmem:[%s5160_s4] sm:$0xf] }
 0x245   :  { %v4041_v62 = vadd.f32 %v1955_v61, %v347_v53  ;;  %v1971_v1 = vmax.f32 %v4039_v58, 0.0  ;;  %v2125_v56 = vrot.slane %v2120_v55, %v5095_v9  ;;  %v2133_v58 = vrot.slane %v2120_v55, %v342_v49 }
 0x246   :  { %v1974_v0 = vmax.f32 %v4040_v60, 0.0  ;;  %v2129_v59 = vrot.slane %v2120_v55, %v5103_v11  ;;  %v2137_v60 = vrot.slane %v2120_v55, %v346_v35 }
 0x247   :  { %v1975_v2 = vmax.f32 %v4041_v62, 0.0 }
 0x248   :  { %v1986_v3 = vpack.c.bf16 %v1974_v0, %v1970_v63 }
 0x249   :  { %v1987_v4 = vpack.c.bf16 %v1975_v2, %v1971_v1  ;;  %v1959_v7 = vpop.f32.mrb[12].mxu1 }
 0x24a   :  { %v4042_v13 = vadd.f32 %v1959_v7, %v343_v50  ;;  %v1961_v14 = vpop.f32.mrb[13].mxu1 }
 0x24b   :  { %v4043_v10 = vadd.f32 %v1961_v14, %v347_v53  ;;  %v1963_v17 = vpop.f32.mrb[14].mxu1  ;;  %2867 = vmatprep.mubr.bf16.mxu0 %v1987_v4  ;;  %2973 = vmatprep.mubr.bf16.mxu1 %v1987_v4 }
 0x24c   :  { %v4044_v18 = vadd.f32 %v1963_v17, %v343_v50  ;;  %v1965_v19 = vpop.f32.mrb[15].mxu1  ;;  %2868 = vmatmul.mubr.bf16.vlgmr.msra.gmra.mrb[8].mxu0 %v1986_v3  ;;  %2974 = vmatmul.mubr.bf16.vlgmr.msra.gmra.mrb[16].mxu1 %v1986_v3  ;;  %v1978_v23 = vmax.f32 %v4042_v13, 0.0  ;;  %v4740_v50 = vld [vmem:[#allocation8 + $0xf4] ss:$8 sps:$4 sm:$0xff]  }
 0x24d   :  { %v4045_v21 = vadd.f32 %v1965_v19, %v347_v53  ;;  %3415 = vmatpush1.bf16.msra.mxu0 %v4693_v12  ;;  %v1979_v20 = vmax.f32 %v4043_v10, 0.0  ;;  %v4738_v53 = vld [vmem:[#allocation8 + $0xf0] ss:$8 sps:$4 sm:$0xff]  }
 0x24e   :  { %v1982_v15 = vmax.f32 %v4044_v18, 0.0  ;;  %3416 = vmatprep.subr.bf16.mxu0 %v4698_v16 }
 0x24f   :  { %v1983_v26 = vmax.f32 %v4045_v21, 0.0 }
 0x250   :  { %v1990_v27 = vpack.c.bf16 %v1982_v15, %v1978_v23 }
 0x251   :  { %v1991_v29 = vpack.c.bf16 %v1983_v26, %v1979_v20  ;;  %3417 = vmatpush1.bf16.msra.mxu0 %v4696_v22 }
 0x252   :  { %3418 = vmatprep.subr.bf16.mxu0 %v4701_v24 }
 0x253   :  { %2877 = vmatprep.mubr.bf16.mxu0 %v1991_v29  ;;  %2983 = vmatprep.mubr.bf16.mxu1 %v1991_v29 }
 0x254   :  { %2878 = vmatmul.mubr.bf16.gmra.mrb[12].mxu0 %v1990_v27  ;;  %2984 = vmatmul.mubr.bf16.gmra.mrb[20].mxu1 %v1990_v27 }
 0x255   :  { %3419 = vmatpush1.bf16.msra.mxu0 %v4699_v30 }
 0x256   :  { %3420 = vmatprep.subr.bf16.mxu0 %v4704_v34  ;;  %v4741_v34 = vld [vmem:[#allocation8 + $0x100] ss:$8 sps:$4 sm:$0xff]  }
 0x259   :  { %3421 = vmatpush1.bf16.msra.mxu0 %v4702_v5 }
 0x25a   :  { %3422 = vmatprep.subr.bf16.mxu0 %v4707_v37 }
 0x25d   :  { %3423 = vmatpush1.bf16.msra.mxu0 %v4705_v28 }
 0x25e   :  { %3424 = vmatprep.subr.bf16.mxu0 %v4710_v38 }
 0x261   :  { %3425 = vmatpush1.bf16.msra.mxu0 %v4708_v25  ;;  %v4746_v25 = vld [vmem:[#allocation8 + $0x114] ss:$8 sps:$4 sm:$0xff]  }
 0x262   :  { %3426 = vmatprep.subr.bf16.mxu0 %v4713_v6 }
 0x265   :  { %3427 = vmatpush1.bf16.msra.mxu0 %v4711_v31 }
 0x266   :  { %3428 = vmatprep.subr.bf16.mxu0 %v4716_v33 }
 0x269   :  { %3429 = vmatpush1.bf16.msra.mxu0 %v4714_v32 }
 0x26a   :  { %3430 = vmatprep.subr.bf16.mxu0 %v4719_v39 }
 0x26d   :  { %3431 = vmatpush1.bf16.msra.mxu0 %v4717_v40 }
 0x26e   :  { %3432 = vmatprep.subr.bf16.mxu0 %v4722_v44 }
 0x271   :  { %3433 = vmatpush1.bf16.msra.mxu0 %v4720_v51 }
 0x272   :  { %3434 = vmatprep.subr.bf16.mxu0 %v4725_v45 }
 0x275   :  { %3435 = vmatpush1.bf16.msra.mxu0 %v4723_v52 }
 0x276   :  { %3436 = vmatprep.subr.bf16.mxu0 %v4728_v42  ;;  %v4744_v42 = vld [vmem:[#allocation8 + $0x110] ss:$8 sps:$4 sm:$0xff]  }
 0x279   :  { %3437 = vmatpush1.bf16.msra.mxu0 %v4726_v46 }
 0x27a   :  { %3438 = vmatprep.subr.bf16.mxu0 %v4731_v43 }
 0x27d   :  { %3439 = vmatpush1.bf16.msra.mxu0 %v4729_v41 }
 0x27e   :  { %3440 = vmatprep.subr.bf16.mxu0 %v4734_v57 }
 0x281   :  { %3441 = vmatpush1.bf16.msra.mxu0 %v4732_v36  ;;  %v4749_v36 = vld [vmem:[#allocation8 + $0x124] ss:$8 sps:$4 sm:$0xff]  }
 0x282   :  { %3442 = vmatprep.subr.bf16.mxu0 %v4737_v47 }
 0x285   :  { %3443 = vmatpush1.bf16.msra.mxu0 %v4735_v48 }
 0x286   :  { %3444 = vmatprep.subr.bf16.mxu0 %v4740_v50 }
 0x289   :  { %3445 = vmatpush1.bf16.msra.mxu0 %v4738_v53 }
 0x28a   :  { %3467 = vmatprep.subr.bf16.mxu0 %v4743_v54 }
 0x31f   :  { %v2869_v61 = vpop.f32.mrb[8].mxu0  ;;  %v2975_v62 = vpop.f32.mrb[16].mxu1 }
 0x320   :  { %v4046_v63 = vadd.f32 %v2869_v61, %v2125_v56  ;;  %v4054_v0 = vadd.f32 %v2975_v62, %v2133_v58  ;;  %v2871_v1 = vpop.f32.mrb[9].mxu0  ;;  %v2977_v2 = vpop.f32.mrb[17].mxu1  ;;  %v4750_v61 = vld [vmem:[#allocation8 + $0x130] ss:$8 sps:$4 sm:$0xff]   ;;  %v4755_v62 = vld [vmem:[#allocation8 + $0x144] ss:$8 sps:$4 sm:$0xff]  }
 0x321   :  { %v4047_v3 = vadd.f32 %v2871_v1, %v2129_v59  ;;  %v4055_v4 = vadd.f32 %v2977_v2, %v2137_v60  ;;  %v2873_v7 = vpop.f32.mrb[10].mxu0  ;;  %v2979_v12 = vpop.f32.mrb[18].mxu1  ;;  %v4756_v1 = vld [vmem:[#allocation8 + $0x150] ss:$8 sps:$4 sm:$0xff]   ;;  %v4761_v2 = vld [vmem:[#allocation8 + $0x164] ss:$8 sps:$4 sm:$0xff]  }
 0x322   :  { %v4048_v13 = vadd.f32 %v2873_v7, %v2125_v56  ;;  %v4056_v14 = vadd.f32 %v2979_v12, %v2133_v58  ;;  %v2875_v16 = vpop.f32.mrb[11].mxu0  ;;  %v2981_v10 = vpop.f32.mrb[19].mxu1  ;;  %v2994_v18 = vmax.f32 %v4046_v63, 0.0  ;;  %v2996_v19 = vmax.f32 %v4054_v0, 0.0  ;;  %v4753_v63 = vld [vmem:[#allocation8 + $0x140] ss:$8 sps:$4 sm:$0xff]  }
 0x323   :  { %v4049_v49 = vadd.f32 %v2875_v16, %v2129_v59  ;;  %v4057_v17 = vadd.f32 %v2981_v10, %v2137_v60  ;;  %v2995_v21 = vmax.f32 %v4047_v3, 0.0  ;;  %v2997_v22 = vmax.f32 %v4055_v4, 0.0  ;;  %v4758_v0 = vld [vmem:[#allocation8 + $0x154] ss:$8 sps:$4 sm:$0xff]   ;;  %v4759_v3 = vld [vmem:[#allocation8 + $0x160] ss:$8 sps:$4 sm:$0xff]  }
 0x324   :  { %v2998_v8 = vmax.f32 %v4048_v13, 0.0  ;;  %v3000_v35 = vmax.f32 %v4056_v14, 0.0  ;;  %v4764_v4 = vld [vmem:[#allocation8 + $0x174] ss:$8 sps:$4 sm:$0xff]   ;;  %v4762_v7 = vld [vmem:[#allocation8 + $0x170] ss:$8 sps:$4 sm:$0xff]  }
 0x325   :  { %v2999_v23 = vmax.f32 %v4049_v49, 0.0  ;;  %v3001_v15 = vmax.f32 %v4057_v17, 0.0  ;;  %v4767_v12 = vld [vmem:[#allocation8 + $0x184] ss:$8 sps:$4 sm:$0xff]   ;;  %v4765_v13 = vld [vmem:[#allocation8 + $0x180] ss:$8 sps:$4 sm:$0xff]  }
 0x326   :  { %v3010_v24 = vpack.c.bf16 %v2998_v8, %v2994_v18  ;;  %v5134_v20 = vpack.c.bf16 %v3000_v35, %v2996_v19  ;;  %v4770_v14 = vld [vmem:[#allocation8 + $0x194] ss:$8 sps:$4 sm:$0xff]   ;;  %v4768_v16 = vld [vmem:[#allocation8 + $0x190] ss:$8 sps:$4 sm:$0xff]   ;;  %v4773_v10 = vld [vmem:[#allocation8 + $0x1a4] ss:$8 sps:$4 sm:$0xff]  }
 0x327   :  { %v3011_v26 = vpack.c.bf16 %v2999_v23, %v2995_v21  ;;  %v3013_v27 = vpack.c.bf16 %v3001_v15, %v2997_v22  ;;  %v2879_v29 = vpop.f32.mrb[12].mxu0  ;;  %v2985_v30 = vpop.f32.mrb[20].mxu1  ;;  %v4771_v49 = vld [vmem:[#allocation8 + $0x1a0] ss:$8 sps:$4 sm:$0xff]   ;;  %v4776_v17 = vld [vmem:[#allocation8 + $0x1b4] ss:$8 sps:$4 sm:$0xff]  }
 0x328   :  { %v4050_v5 = vadd.f32 %v2879_v29, %v2125_v56  ;;  %v4058_v37 = vadd.f32 %v2985_v30, %v2133_v58  ;;  %v2881_v28 = vpop.f32.mrb[13].mxu0  ;;  %v2987_v38 = vpop.f32.mrb[21].mxu1  ;;  %v4774_v18 = vld [vmem:[#allocation8 + $0x1b0] ss:$8 sps:$4 sm:$0xff]   ;;  %v4779_v19 = vld [vmem:[#allocation8 + $0x1c4] ss:$8 sps:$4 sm:$0xff]  }
 0x329   :  { %v4051_v6 = vadd.f32 %v2881_v28, %v2129_v59  ;;  %v4059_v31 = vadd.f32 %v2987_v38, %v2137_v60  ;;  %v2883_v33 = vpop.f32.mrb[14].mxu0  ;;  %v2989_v32 = vpop.f32.mrb[22].mxu1  ;;  %3446 = vmatprep.mubr.bf16.mxu0 %v3011_v26  ;;  %v4777_v8 = vld [vmem:[#allocation8 + $0x1c0] ss:$8 sps:$4 sm:$0xff]   ;;  %v4782_v35 = vld [vmem:[#allocation8 + $0x1d4] ss:$8 sps:$4 sm:$0xff]  }
 0x32a   :  { %v4052_v39 = vadd.f32 %v2883_v33, %v2125_v56  ;;  %v4060_v40 = vadd.f32 %v2989_v32, %v2133_v58  ;;  %v2885_v44 = vpop.f32.mrb[15].mxu0  ;;  %v2991_v51 = vpop.f32.mrb[23].mxu1  ;;  %3447 = vmatmul.mubr.bf16.vlgmr.msra.gmra.mrb[16].mxu0 %v3010_v24  ;;  %v3002_v46 = vmax.f32 %v4050_v5, 0.0  ;;  %v3004_v43 = vmax.f32 %v4058_v37, 0.0  ;;  %v4780_v21 = vld [vmem:[#allocation8 + $0x1d0] ss:$8 sps:$4 sm:$0xff]  }
 0x32b   :  { %v4053_v45 = vadd.f32 %v2885_v44, %v2129_v59  ;;  %v4061_v52 = vadd.f32 %v2991_v51, %v2137_v60  ;;  %3468 = vmatpush1.bf16.msra.mxu0 %v4741_v34  ;;  %v3003_v47 = vmax.f32 %v4051_v6, 0.0  ;;  %v3005_v48 = vmax.f32 %v4059_v31, 0.0  ;;  %v4747_v59 = vld [vmem:[#allocation8 + $0x120] ss:$8 sps:$4 sm:$0xff]   ;;  %v4752_v60 = vld [vmem:[#allocation8 + $0x134] ss:$8 sps:$4 sm:$0xff]  }
 0x32c   :  { %v3006_v41 = vmax.f32 %v4052_v39, 0.0  ;;  %v3008_v57 = vmax.f32 %v4060_v40, 0.0  ;;  %3469 = vmatprep.subr.bf16.mxu0 %v4746_v25  ;;  %v4785_v22 = vld [vmem:[#allocation8 + $0x1e4] ss:$8 sps:$4 sm:$0xff]   ;;  %v4783_v23 = vld [vmem:[#allocation8 + $0x1e0] ss:$8 sps:$4 sm:$0xff]  }
 0x32d   :  { %v3007_v50 = vmax.f32 %v4053_v45, 0.0  ;;  %v3009_v53 = vmax.f32 %v4061_v52, 0.0  ;;  %v4788_v15 = vld [vmem:[#allocation8 + $0x1f4] ss:$8 sps:$4 sm:$0xff]   ;;  %v4786_v24 = vld [vmem:[#allocation8 + $0x1f0] ss:$8 sps:$4 sm:$0xff]  }
 0x32e   :  { %v3014_v54 = vpack.c.bf16 %v3006_v41, %v3002_v46  ;;  %v5136_v55 = vpack.c.bf16 %v3008_v57, %v3004_v43  ;;  %v3082_v26 = vld [vmem:[%s5162_s6] sm:$0x3] }
 0x32f   :  { %v3015_v56 = vpack.c.bf16 %v3007_v50, %v3003_v47  ;;  %v3017_v58 = vpack.c.bf16 %v3009_v53, %v3005_v48  ;;  %3470 = vmatpush1.bf16.msra.mxu0 %v4744_v42  ;;  %v3087_v34 = vrot.slane %v3082_v26, %v5095_v9  ;;  %v3091_v37 = vrot.slane %v3082_v26, %v5103_v11  ;;  %v3536_v40 = vld [vmem:[%s5163_s7] sm:$0x3] }
 0x330   :  { %3471 = vmatprep.subr.bf16.mxu0 %v4749_v36  ;;  %v3541_v47 = vrot.slane %v3536_v40, %v5095_v9  ;;  %v4019_v9 = vld [vmem:[#allocation2] ss:$0 sm:$0xff] }
 0x331   :  { %3456 = vmatprep.mubr.bf16.mxu0 %v3015_v56 }
 0x332   :  { %3457 = vmatmul.mubr.bf16.gmra.mrb[20].mxu0 %v3014_v54  ;;  %v3545_v54 = vrot.slane %v3536_v40, %v5103_v11 }
 0x333   :  { %3472 = vmatpush1.bf16.msra.mxu0 %v4747_v59  ;;  %3499 = vmatprep.mubr.bf16.mxu0 %v3013_v27 }
 0x334   :  { %3473 = vmatprep.subr.bf16.mxu0 %v4752_v60 }
 0x337   :  { %3474 = vmatpush1.bf16.msra.mxu0 %v4750_v61 }
 0x338   :  { %3475 = vmatprep.subr.bf16.mxu0 %v4755_v62 }
 0x33b   :  { %3476 = vmatpush1.bf16.msra.mxu0 %v4753_v63 }
 0x33c   :  { %3477 = vmatprep.subr.bf16.mxu0 %v4758_v0 }
 0x33f   :  { %3478 = vmatpush1.bf16.msra.mxu0 %v4756_v1 }
 0x340   :  { %3479 = vmatprep.subr.bf16.mxu0 %v4761_v2 }
 0x343   :  { %3480 = vmatpush1.bf16.msra.mxu0 %v4759_v3 }
 0x344   :  { %3481 = vmatprep.subr.bf16.mxu0 %v4764_v4 }
 0x347   :  { %3482 = vmatpush1.bf16.msra.mxu0 %v4762_v7 }
 0x348   :  { %3483 = vmatprep.subr.bf16.mxu0 %v4767_v12 }
 0x34b   :  { %3484 = vmatpush1.bf16.msra.mxu0 %v4765_v13 }
 0x34c   :  { %3485 = vmatprep.subr.bf16.mxu0 %v4770_v14 }
 0x34f   :  { %3486 = vmatpush1.bf16.msra.mxu0 %v4768_v16 }
 0x350   :  { %3487 = vmatprep.subr.bf16.mxu0 %v4773_v10 }
 0x353   :  { %3488 = vmatpush1.bf16.msra.mxu0 %v4771_v49 }
 0x354   :  { %3489 = vmatprep.subr.bf16.mxu0 %v4776_v17 }
 0x357   :  { %3490 = vmatpush1.bf16.msra.mxu0 %v4774_v18 }
 0x358   :  { %3491 = vmatprep.subr.bf16.mxu0 %v4779_v19 }
 0x35b   :  { %3492 = vmatpush1.bf16.msra.mxu0 %v4777_v8 }
 0x35c   :  { %3493 = vmatprep.subr.bf16.mxu0 %v4782_v35 }
 0x35f   :  { %3494 = vmatpush1.bf16.msra.mxu0 %v4780_v21 }
 0x360   :  { %3495 = vmatprep.subr.bf16.mxu0 %v4785_v22 }
 0x363   :  { %3496 = vmatpush1.bf16.msra.mxu0 %v4783_v23 }
 0x364   :  { %3497 = vmatprep.subr.bf16.mxu0 %v4788_v15 }
 0x367   :  { %3498 = vmatpush1.bf16.msra.mxu0 %v4786_v24 }
 0x36a   :  { %3500 = vmatmul.mubr.bf16.vlgmr.msra.gmra.mrb[16].mxu0 %v5134_v20 }
 0x36b   :  { %3509 = vmatprep.mubr.bf16.mxu0 %v3017_v58 }
 0x372   :  { %3510 = vmatmul.mubr.bf16.gmra.mrb[20].mxu0 %v5136_v55 }
 0x43d   :  { %v3501_v27 = vpop.f32.mrb[16].mxu0 }
 0x43e   :  { %v3503_v29 = vpop.f32.mrb[17].mxu0  ;;  %v4062_v28 = vadd.f32 %v3501_v27, %v3087_v34 }
 0x43f   :  { %v3505_v30 = vpop.f32.mrb[18].mxu0  ;;  %v4063_v38 = vadd.f32 %v3503_v29, %v3091_v37 }
 0x440   :  { %v3507_v5 = vpop.f32.mrb[19].mxu0  ;;  %v4064_v6 = vadd.f32 %v3505_v30, %v3087_v34  ;;  %v3520_v44 = vmax.f32 %v4062_v28, 0.0 }
 0x441   :  { %v4065_v33 = vadd.f32 %v3507_v5, %v3091_v37  ;;  %v3521_v42 = vmax.f32 %v4063_v38, 0.0 }
 0x442   :  { %v3522_v41 = vmax.f32 %v4064_v6, 0.0 }
 0x443   :  { %v3523_v48 = vmax.f32 %v4065_v33, 0.0 }
 0x445   :  { %v3511_v25 = vpop.f32.mrb[20].mxu0 }
 0x446   :  { %v4066_v20 = vadd.f32 %v3511_v25, %v3087_v34  ;;  %v3513_v31 = vpop.f32.mrb[21].mxu0 }
 0x447   :  { %v4067_v32 = vadd.f32 %v3513_v31, %v3091_v37  ;;  %v3515_v39 = vpop.f32.mrb[22].mxu0 }
 0x448   :  { %v3524_v51 = vmax.f32 %v4066_v20, 0.0  ;;  %v4068_v45 = vadd.f32 %v3515_v39, %v3087_v34  ;;  %v3517_v52 = vpop.f32.mrb[23].mxu0 }
 0x449   :  { %v3525_v46 = vmax.f32 %v4067_v32, 0.0  ;;  %v4069_v43 = vadd.f32 %v3517_v52, %v3091_v37 }
 0x44a   :  { %v3528_v57 = vsub.f32 %v3520_v44, %v3524_v51  ;;  %v3526_v36 = vmax.f32 %v4068_v45, 0.0 }
 0x44b   :  { %v3529_v50 = vsub.f32 %v3521_v42, %v3525_v46  ;;  %v3527_v53 = vmax.f32 %v4069_v43, 0.0 }
 0x44c   :  { %v3532_v55 = vand.u32 2147483647, %v3528_v57  ;;  %v3530_v56 = vsub.f32 %v3522_v41, %v3526_v36 }
 0x44d   :  { %v3533_v58 = vand.u32 2147483647, %v3529_v50  ;;  %v3531_v59 = vsub.f32 %v3523_v48, %v3527_v53 }
 0x44e   :  { %v3534_v60 = vand.u32 2147483647, %v3530_v56  ;;  %v3548_v61 = vmul.f32 %v3541_v47, %v3532_v55 }
 0x44f   :  { %v3535_v62 = vand.u32 2147483647, %v3531_v59  ;;  %v3549_v63 = vmul.f32 %v3545_v54, %v3533_v58 }
 0x450   :  { %v3550_v0 = vmul.f32 %v3541_v47, %v3534_v60 }
 0x451   :  { %v3552_v1 = vadd.f32 %v3549_v63, %v3548_v61  ;;  %v3551_v2 = vmul.f32 %v3545_v54, %v3535_v62 }
 0x453   :  { %3553 = vadd.xlane.f32.xlu0 %v3552_v1  ;;  %v3555_v3 = vadd.f32 %v3551_v2, %v3550_v0 }
 0x457   :  { %3556 = vadd.xlane.f32.xlu0 %v3555_v3 }
 0x4e0   :  { %v3554_v4 = vpop.xlane.xlu0 %3553 }
 0x4e1   :  { %v3565_v7 = vadd.f32 %v4019_v9, %v3554_v4 }
 0x4e3   :  { %v4020_v12 = vmul.f32 -1.442695, %v3565_v7 }
 0x4e4   :  { %v3557_v13 = vpop.xlane.xlu0 %3556 }
 0x4e5   :  { %4789 = vpow2.f32 %v4020_v12  ;;  %v3566_v11 = vadd.f32 %v4019_v9, %v3557_v13 }
 0x4e7   :  { %v4021_v14 = vmul.f32 -1.442695, %v3566_v11 }
 0x4e9   :  { %4791 = vpow2.f32 %v4021_v14 }
 0x4ef   :  { %v4790_v16 = vpop.eup %4789 }
 0x4f0   :  { %v3573_v10 = vadd.f32 1.0, %v4790_v16 }
 0x4f2   :  { %4793 = vrcp.f32 %v3573_v10 }
 0x4f3   :  { %v4792_v49 = vpop.eup %4791 }
 0x4f4   :  { %v3574_v17 = vadd.f32 1.0, %v4792_v49 }
 0x4f6   :  { %4795 = vrcp.f32 %v3574_v17 }
 0x4fc   :  { %v4794_v18 = vpop.eup %4793 }
 0x4fd   :  { %3580 = vst.msk [vmem:[%s5165_s9] sm:$0xff] %vm3579_vm0, %v4794_v18 }
 0x500   :  { %v4796_v19 = vpop.eup %4795 }
 0x501   :  { %3581 = vst.msk [vmem:[%s5165_s9 + $0x8] sm:$0xff] %vm3579_vm0, %v4796_v19 }
 0x502   :  { %3586 = vsyncpa [#allocation4], 1 }
 0x503   :  { %3587 = vsyncpa [#allocation6], 1 }
 0x504   :  { %3588 = vsyncpa [#allocation9], 1 }

</bundles_post_ra>
